<compile_context>
chip_gen: v7x
topology: tpu7x:2x2x1
jax: 0.10.0
libtpu: 0.0.40
codegen_flags: <defaults>
</compile_context>

<pallas_src>
import functools

import jax
import jax.numpy as jnp
from jax import lax
from jax.experimental import pallas as pl
from jax.experimental.pallas import tpu as pltpu

LN_EPS = 1e-12


def _small_table_lookup(ids_col, tab_f32):
    """Gather rows of a tiny VMEM-resident table via masked accumulation.

    ids_col: (rows, 1) int32, tab_f32: (V, H) f32 with V small & static.
    Pure VPU broadcast-compare/select work; overlaps the word-row gather DMAs.
    """
    rows = ids_col.shape[0]
    V, H = tab_f32.shape
    acc = jnp.zeros((rows, H), jnp.float32)
    for v in range(V):  # V is tiny (2 / 16): unrolled at trace time
        acc = acc + jnp.where(ids_col == v, tab_f32[v:v + 1, :], 0.0)
    return acc


def _bert_embeddings_kernel(wid_ref,                    # scalar-prefetch word ids (SMEM, (n_pad,))
                            word_tab,                   # HBM ref (pl.ANY), (vocab, H)
                            seg_tab_ref, age_tab_ref,   # VMEM-resident tiny tables
                            sid_ref, aid_ref,           # VMEM (rt, 1) int32 per tile
                            gamma_ref, beta_ref,        # VMEM (1, H)
                            out_ref,                    # VMEM (rt, H)
                            wbuf, sem,                  # scratch: (rt, H) staging + DMA sems (2,)
                            *, rt, rh):
    i = pl.program_id(0)
    tile_base = i * rt  # hoisted once per step

    # ---- issue the word-row gather for this tile (two halves, 4-way unrolled) ------
    def issue_half(half):
        start = half * rh
        @pl.loop(start, start + rh, step=4)
        def _issue(r):
            for u in range(4):  # manual unroll: pack descriptor setup across bundles
                row = wid_ref[tile_base + r + u]
                pltpu.make_async_copy(word_tab.at[pl.ds(row, 1)],
                                      wbuf.at[pl.ds(r + u, 1)],
                                      sem.at[half]).start()

    issue_half(0)
    issue_half(1)
    # NOTE: padded rows in the last tile gather id 0 (always a valid row; wrapper pads
    # ids with 0) so the batched per-half wait byte counts always match what was issued.

    # ---- seg / age embeddings from VMEM tables (overlaps the gather DMAs) ----------
    g = gamma_ref[...].astype(jnp.float32)
    b = beta_ref[...].astype(jnp.float32)
    seg_emb = _small_table_lookup(sid_ref[...], seg_tab_ref[...].astype(jnp.float32))
    age_emb = _small_table_lookup(aid_ref[...], age_tab_ref[...].astype(jnp.float32))
    sa = seg_emb + age_emb                                        # (rt, H) f32

    # ---- per half: ONE batched wait, add word rows, BertLayerNorm, store -----------
    def finish_half(half):
        rows = pl.ds(half * rh, rh)
        # Batched wait: a single descriptor covering the half's (rh, H) staging bytes,
        # equal to the sum of its rh issued row copies.
        pltpu.make_async_copy(wbuf.at[rows], wbuf.at[rows], sem.at[half]).wait()
        emb = wbuf[rows, :].astype(jnp.float32) + sa[half * rh:(half + 1) * rh, :]
        u = jnp.mean(emb, axis=-1, keepdims=True)
        xc = emb - u
        var = jnp.mean(xc * xc, axis=-1, keepdims=True)
        out_ref[rows, :] = ((xc * lax.rsqrt(var + LN_EPS)) * g + b).astype(out_ref.dtype)

    finish_half(0)   # runs while half 1's DMAs are still in flight
    finish_half(1)
    # TODO(synk): nn.Dropout is identity in eval mode; training-mode dropout
    # (pltpu.prng_random_bits mask + rescale) is not applied here.


@functools.partial(jax.jit, static_argnames=("row_tile",))
def _bert_embeddings_impl(word_ids, seg_ids, age_ids,
                          word_table, seg_table, age_table,
                          gamma, beta, *, row_tile):
    B, S = word_ids.shape
    N = B * S
    H = word_table.shape[1]

    def round_up(x, m):
        return ((x + m - 1) // m) * m

    # Tile sizing: multiple of 16 (so each half is sublane aligned), large to amortize
    # per-step overhead, but split so moderate inputs still give >= 2 grid steps for
    # the "parallel" axis (v7x has 2 TensorCores).
    rt = min(row_tile, round_up(N, 16))
    if N > rt and N <= 2 * rt:
        rt = round_up((N + 1) // 2, 16)
    rt = max(16, rt)
    rh = rt // 2
    num_tiles = (N + rt - 1) // rt
    n_pad = num_tiles * rt

    def flat_pad(x):
        x = x.reshape(-1).astype(jnp.int32)
        return jnp.pad(x, (0, n_pad - N))   # padded rows use id 0 (valid), sliced off below

    wid = flat_pad(word_ids)
    sid2 = flat_pad(seg_ids).reshape(n_pad, 1)
    aid2 = flat_pad(age_ids).reshape(n_pad, 1)
    gamma2 = gamma.reshape(1, H).astype(jnp.float32)
    beta2 = beta.reshape(1, H).astype(jnp.float32)

    kernel = functools.partial(_bert_embeddings_kernel, rt=rt, rh=rh)

    out = pl.pallas_call(
        kernel,
        out_shape=jax.ShapeDtypeStruct((n_pad, H), jnp.float32),
        grid_spec=pltpu.PrefetchScalarGridSpec(
            num_scalar_prefetch=1,
            grid=(num_tiles,),
            in_specs=[
                pl.BlockSpec(memory_space=pl.ANY),                      # word table stays in HBM
                pl.BlockSpec(tuple(seg_table.shape), lambda i, *_: (0, 0)),  # tiny -> VMEM resident
                pl.BlockSpec(tuple(age_table.shape), lambda i, *_: (0, 0)),  # tiny -> VMEM resident
                pl.BlockSpec((rt, 1), lambda i, *_: (i, 0)),            # seg ids per tile
                pl.BlockSpec((rt, 1), lambda i, *_: (i, 0)),            # age ids per tile
                pl.BlockSpec((1, H), lambda i, *_: (0, 0)),             # gamma
                pl.BlockSpec((1, H), lambda i, *_: (0, 0)),             # beta
            ],
            out_specs=pl.BlockSpec((rt, H), lambda i, *_: (i, 0)),
            scratch_shapes=[
                pltpu.VMEM((rt, H), word_table.dtype),  # gathered word rows (table's own dtype)
                pltpu.SemaphoreType.DMA((2,)),          # one semaphore per half-tile
            ],
        ),
        compiler_params=pltpu.CompilerParams(
            dimension_semantics=("parallel",),          # row tiles shard across v7x's 2 TCs
            vmem_limit_bytes=32 * 1024 * 1024,
        ),
    )(wid, word_table, seg_table, age_table, sid2, aid2, gamma2, beta2)

    return out[:N].reshape(B, S, H)


def bert_embeddings(word_ids, age_ids=None, seg_ids=None, *,
                    word_table, seg_table, age_table, gamma, beta, row_tile=512):
    """Mirrors BertEmbeddings.forward(word_ids, age_ids=None, seg_ids=None)."""
    if seg_ids is None:
        seg_ids = jnp.zeros_like(word_ids)
    if age_ids is None:
        age_ids = jnp.zeros_like(word_ids)
    return _bert_embeddings_impl(word_ids, seg_ids, age_ids,
                                 word_table, seg_table, age_table,
                                 gamma, beta, row_tile=row_tile)


if __name__ == "__main__":
    # Small config consistent with the module's __init__ (H chosen lane-dense = 128).
    vocab_size = 64
    seg_vocab_size = 2
    age_vocab_size = 16
    hidden_size = 128
    B, S = 2, 8

    key = jax.random.PRNGKey(0)
    k_w, k_s, k_a, k_wid, k_aid, k_sid = jax.random.split(key, 6)

    word_table = 0.02 * jax.random.normal(k_w, (vocab_size, hidden_size), jnp.float32)
    seg_table = 0.02 * jax.random.normal(k_s, (seg_vocab_size, hidden_size), jnp.float32)
    age_table = 0.02 * jax.random.normal(k_a, (age_vocab_size, hidden_size), jnp.float32)
    gamma = jnp.ones((hidden_size,), jnp.float32)
    beta = jnp.zeros((hidden_size,), jnp.float32)

    word_ids = jax.random.randint(k_wid, (B, S), 0, vocab_size, jnp.int32)
    age_ids = jax.random.randint(k_aid, (B, S), 0, age_vocab_size, jnp.int32)
    seg_ids = jax.random.randint(k_sid, (B, S), 0, seg_vocab_size, jnp.int32)

    out = bert_embeddings(word_ids, age_ids, seg_ids,
                          word_table=word_table, seg_table=seg_table,
                          age_table=age_table, gamma=gamma, beta=beta)
    jax.block_until_ready(out)

    # Pure-JAX reference check
    emb = word_table[word_ids] + seg_table[seg_ids] + age_table[age_ids]
    u = emb.mean(-1, keepdims=True)
    s = ((emb - u) ** 2).mean(-1, keepdims=True)
    ref = (emb - u) / jnp.sqrt(s + LN_EPS) * gamma + beta

    assert out.shape == (B, S, hidden_size)
    assert jnp.allclose(out, ref, atol=1e-4, rtol=1e-4)

    print("KERNEL_OK")
</pallas_src>

<mosaic_0001>
module attributes {stable_mosaic.version = 11 : i64} {
  func.func @_bert_embeddings_kernel(%arg0: i32, %arg1: memref<16xi32, #tpu.memory_space<smem>>, %arg2: memref<64x128xf32, #tpu.memory_space<any>>, %arg3: memref<2x128xf32, #tpu.memory_space<vmem>>, %arg4: memref<16x128xf32, #tpu.memory_space<vmem>>, %arg5: memref<16x1xi32, #tpu.memory_space<vmem>>, %arg6: memref<16x1xi32, #tpu.memory_space<vmem>>, %arg7: memref<1x128xf32, #tpu.memory_space<vmem>>, %arg8: memref<1x128xf32, #tpu.memory_space<vmem>>, %arg9: memref<16x128xf32, #tpu.memory_space<vmem>>, %arg10: memref<16x128xf32, #tpu.memory_space<vmem>>, %arg11: memref<2x!tpu.dma_semaphore, #tpu.memory_space<semaphore_mem>>) attributes {dimension_semantics = [#tpu.dimension_semantics<parallel>], iteration_bounds = array<i64: 1>, scalar_prefetch = 1 : i64, scratch_operands = 2 : i64, tpu.core_type = #tpu.core_type<tc>, window_params = [{}, {pipeline_mode = #tpu.pipeline_mode<synchronous>, transform_indices = @transform_1, window_bounds = array<i64: 2, 128>}, {pipeline_mode = #tpu.pipeline_mode<synchronous>, transform_indices = @transform_2, window_bounds = array<i64: 16, 128>}, {transform_indices = @transform_3, window_bounds = array<i64: 16, 1>}, {transform_indices = @transform_4, window_bounds = array<i64: 16, 1>}, {pipeline_mode = #tpu.pipeline_mode<synchronous>, transform_indices = @transform_5, window_bounds = array<i64: 1, 128>}, {pipeline_mode = #tpu.pipeline_mode<synchronous>, transform_indices = @transform_6, window_bounds = array<i64: 1, 128>}, {transform_indices = @transform_7, window_bounds = array<i64: 16, 128>}]} {
    %c16_i32 = arith.constant 16 : i32
    %0 = arith.muli %arg0, %c16_i32 : i32
    %c0_i32 = arith.constant 0 : i32
    %c2_i32 = arith.constant 2 : i32
    %1 = arith.addi %c0_i32, %c2_i32 : i32
    %c1_i32 = arith.constant 1 : i32
    scf.for %arg12 = %c0_i32 to %1 step %c1_i32  : i32 {
      %c4_i32_67 = arith.constant 4 : i32
      %248 = arith.muli %arg12, %c4_i32_67 : i32
      %c0_i32_68 = arith.constant 0 : i32
      %249 = arith.addi %c0_i32_68, %248 : i32
      %250 = arith.addi %0, %249 : i32
      %c0_i32_69 = arith.constant 0 : i32
      %251 = arith.addi %250, %c0_i32_69 : i32
      %252 = arith.index_cast %251 : i32 to index
      %253 = memref.load %arg1[%252] : memref<16xi32, #tpu.memory_space<smem>>
      %c0_i32_70 = arith.constant 0 : i32
      %254 = arith.addi %249, %c0_i32_70 : i32
      %c0_i32_71 = arith.constant 0 : i32
      %c0_i32_72 = arith.constant 0 : i32
      %255 = tpu.memref_slice %arg2[%253, %c0_i32_72] : memref<64x128xf32, #tpu.memory_space<any>> -> memref<1x128xf32, #tpu.memory_space<any>>
      %c0_i32_73 = arith.constant 0 : i32
      %256 = tpu.memref_slice %arg10[%254, %c0_i32_73] : memref<16x128xf32, #tpu.memory_space<vmem>> -> memref<1x128xf32, #tpu.memory_space<vmem>>
      %257 = tpu.memref_slice %arg11[%c0_i32_71] : memref<2x!tpu.dma_semaphore, #tpu.memory_space<semaphore_mem>> -> memref<1x!tpu.dma_semaphore, #tpu.memory_space<semaphore_mem>>
      %258 = tpu.memref_squeeze %257 : memref<1x!tpu.dma_semaphore, #tpu.memory_space<semaphore_mem>> -> memref<!tpu.dma_semaphore, #tpu.memory_space<semaphore_mem>>
      tpu.enqueue_dma source(%255 : memref<1x128xf32, #tpu.memory_space<any>>) target(%256 : memref<1x128xf32, #tpu.memory_space<vmem>>) target_semaphore(%258 : memref<!tpu.dma_semaphore, #tpu.memory_space<semaphore_mem>>)
      %259 = arith.addi %0, %249 : i32
      %c1_i32_74 = arith.constant 1 : i32
      %260 = arith.addi %259, %c1_i32_74 : i32
      %261 = arith.index_cast %260 : i32 to index
      %262 = memref.load %arg1[%261] : memref<16xi32, #tpu.memory_space<smem>>
      %c1_i32_75 = arith.constant 1 : i32
      %263 = arith.addi %249, %c1_i32_75 : i32
      %c0_i32_76 = arith.constant 0 : i32
      %c0_i32_77 = arith.constant 0 : i32
      %264 = tpu.memref_slice %arg2[%262, %c0_i32_77] : memref<64x128xf32, #tpu.memory_space<any>> -> memref<1x128xf32, #tpu.memory_space<any>>
      %c0_i32_78 = arith.constant 0 : i32
      %265 = tpu.memref_slice %arg10[%263, %c0_i32_78] : memref<16x128xf32, #tpu.memory_space<vmem>> -> memref<1x128xf32, #tpu.memory_space<vmem>>
      %266 = tpu.memref_slice %arg11[%c0_i32_76] : memref<2x!tpu.dma_semaphore, #tpu.memory_space<semaphore_mem>> -> memref<1x!tpu.dma_semaphore, #tpu.memory_space<semaphore_mem>>
      %267 = tpu.memref_squeeze %266 : memref<1x!tpu.dma_semaphore, #tpu.memory_space<semaphore_mem>> -> memref<!tpu.dma_semaphore, #tpu.memory_space<semaphore_mem>>
      tpu.enqueue_dma source(%264 : memref<1x128xf32, #tpu.memory_space<any>>) target(%265 : memref<1x128xf32, #tpu.memory_space<vmem>>) target_semaphore(%267 : memref<!tpu.dma_semaphore, #tpu.memory_space<semaphore_mem>>)
      %268 = arith.addi %0, %249 : i32
      %c2_i32_79 = arith.constant 2 : i32
      %269 = arith.addi %268, %c2_i32_79 : i32
      %270 = arith.index_cast %269 : i32 to index
      %271 = memref.load %arg1[%270] : memref<16xi32, #tpu.memory_space<smem>>
      %c2_i32_80 = arith.constant 2 : i32
      %272 = arith.addi %249, %c2_i32_80 : i32
      %c0_i32_81 = arith.constant 0 : i32
      %c0_i32_82 = arith.constant 0 : i32
      %273 = tpu.memref_slice %arg2[%271, %c0_i32_82] : memref<64x128xf32, #tpu.memory_space<any>> -> memref<1x128xf32, #tpu.memory_space<any>>
      %c0_i32_83 = arith.constant 0 : i32
      %274 = tpu.memref_slice %arg10[%272, %c0_i32_83] : memref<16x128xf32, #tpu.memory_space<vmem>> -> memref<1x128xf32, #tpu.memory_space<vmem>>
      %275 = tpu.memref_slice %arg11[%c0_i32_81] : memref<2x!tpu.dma_semaphore, #tpu.memory_space<semaphore_mem>> -> memref<1x!tpu.dma_semaphore, #tpu.memory_space<semaphore_mem>>
      %276 = tpu.memref_squeeze %275 : memref<1x!tpu.dma_semaphore, #tpu.memory_space<semaphore_mem>> -> memref<!tpu.dma_semaphore, #tpu.memory_space<semaphore_mem>>
      tpu.enqueue_dma source(%273 : memref<1x128xf32, #tpu.memory_space<any>>) target(%274 : memref<1x128xf32, #tpu.memory_space<vmem>>) target_semaphore(%276 : memref<!tpu.dma_semaphore, #tpu.memory_space<semaphore_mem>>)
      %277 = arith.addi %0, %249 : i32
      %c3_i32_84 = arith.constant 3 : i32
      %278 = arith.addi %277, %c3_i32_84 : i32
      %279 = arith.index_cast %278 : i32 to index
      %280 = memref.load %arg1[%279] : memref<16xi32, #tpu.memory_space<smem>>
      %c3_i32_85 = arith.constant 3 : i32
      %281 = arith.addi %249, %c3_i32_85 : i32
      %c0_i32_86 = arith.constant 0 : i32
      %c0_i32_87 = arith.constant 0 : i32
      %282 = tpu.memref_slice %arg2[%280, %c0_i32_87] : memref<64x128xf32, #tpu.memory_space<any>> -> memref<1x128xf32, #tpu.memory_space<any>>
      %c0_i32_88 = arith.constant 0 : i32
      %283 = tpu.memref_slice %arg10[%281, %c0_i32_88] : memref<16x128xf32, #tpu.memory_space<vmem>> -> memref<1x128xf32, #tpu.memory_space<vmem>>
      %284 = tpu.memref_slice %arg11[%c0_i32_86] : memref<2x!tpu.dma_semaphore, #tpu.memory_space<semaphore_mem>> -> memref<1x!tpu.dma_semaphore, #tpu.memory_space<semaphore_mem>>
      %285 = tpu.memref_squeeze %284 : memref<1x!tpu.dma_semaphore, #tpu.memory_space<semaphore_mem>> -> memref<!tpu.dma_semaphore, #tpu.memory_space<semaphore_mem>>
      tpu.enqueue_dma source(%282 : memref<1x128xf32, #tpu.memory_space<any>>) target(%283 : memref<1x128xf32, #tpu.memory_space<vmem>>) target_semaphore(%285 : memref<!tpu.dma_semaphore, #tpu.memory_space<semaphore_mem>>)
    }
    %c2_i32_0 = arith.constant 2 : i32
    %c0_i32_1 = arith.constant 0 : i32
    %c2_i32_2 = arith.constant 2 : i32
    %2 = arith.addi %c0_i32_1, %c2_i32_2 : i32
    %c1_i32_3 = arith.constant 1 : i32
    scf.for %arg12 = %c0_i32_1 to %2 step %c1_i32_3  : i32 {
      %c4_i32_67 = arith.constant 4 : i32
      %248 = arith.muli %arg12, %c4_i32_67 : i32
      %c8_i32_68 = arith.constant 8 : i32
      %249 = arith.addi %c8_i32_68, %248 : i32
      %250 = arith.addi %0, %249 : i32
      %c0_i32_69 = arith.constant 0 : i32
      %251 = arith.addi %250, %c0_i32_69 : i32
      %252 = arith.index_cast %251 : i32 to index
      %253 = memref.load %arg1[%252] : memref<16xi32, #tpu.memory_space<smem>>
      %c0_i32_70 = arith.constant 0 : i32
      %254 = arith.addi %249, %c0_i32_70 : i32
      %c1_i32_71 = arith.constant 1 : i32
      %c0_i32_72 = arith.constant 0 : i32
      %255 = tpu.memref_slice %arg2[%253, %c0_i32_72] : memref<64x128xf32, #tpu.memory_space<any>> -> memref<1x128xf32, #tpu.memory_space<any>>
      %c0_i32_73 = arith.constant 0 : i32
      %256 = tpu.memref_slice %arg10[%254, %c0_i32_73] : memref<16x128xf32, #tpu.memory_space<vmem>> -> memref<1x128xf32, #tpu.memory_space<vmem>>
      %257 = tpu.memref_slice %arg11[%c1_i32_71] : memref<2x!tpu.dma_semaphore, #tpu.memory_space<semaphore_mem>> -> memref<1x!tpu.dma_semaphore, #tpu.memory_space<semaphore_mem>>
      %258 = tpu.memref_squeeze %257 : memref<1x!tpu.dma_semaphore, #tpu.memory_space<semaphore_mem>> -> memref<!tpu.dma_semaphore, #tpu.memory_space<semaphore_mem>>
      tpu.enqueue_dma source(%255 : memref<1x128xf32, #tpu.memory_space<any>>) target(%256 : memref<1x128xf32, #tpu.memory_space<vmem>>) target_semaphore(%258 : memref<!tpu.dma_semaphore, #tpu.memory_space<semaphore_mem>>)
      %259 = arith.addi %0, %249 : i32
      %c1_i32_74 = arith.constant 1 : i32
      %260 = arith.addi %259, %c1_i32_74 : i32
      %261 = arith.index_cast %260 : i32 to index
      %262 = memref.load %arg1[%261] : memref<16xi32, #tpu.memory_space<smem>>
      %c1_i32_75 = arith.constant 1 : i32
      %263 = arith.addi %249, %c1_i32_75 : i32
      %c1_i32_76 = arith.constant 1 : i32
      %c0_i32_77 = arith.constant 0 : i32
      %264 = tpu.memref_slice %arg2[%262, %c0_i32_77] : memref<64x128xf32, #tpu.memory_space<any>> -> memref<1x128xf32, #tpu.memory_space<any>>
      %c0_i32_78 = arith.constant 0 : i32
      %265 = tpu.memref_slice %arg10[%263, %c0_i32_78] : memref<16x128xf32, #tpu.memory_space<vmem>> -> memref<1x128xf32, #tpu.memory_space<vmem>>
      %266 = tpu.memref_slice %arg11[%c1_i32_76] : memref<2x!tpu.dma_semaphore, #tpu.memory_space<semaphore_mem>> -> memref<1x!tpu.dma_semaphore, #tpu.memory_space<semaphore_mem>>
      %267 = tpu.memref_squeeze %266 : memref<1x!tpu.dma_semaphore, #tpu.memory_space<semaphore_mem>> -> memref<!tpu.dma_semaphore, #tpu.memory_space<semaphore_mem>>
      tpu.enqueue_dma source(%264 : memref<1x128xf32, #tpu.memory_space<any>>) target(%265 : memref<1x128xf32, #tpu.memory_space<vmem>>) target_semaphore(%267 : memref<!tpu.dma_semaphore, #tpu.memory_space<semaphore_mem>>)
      %268 = arith.addi %0, %249 : i32
      %c2_i32_79 = arith.constant 2 : i32
      %269 = arith.addi %268, %c2_i32_79 : i32
      %270 = arith.index_cast %269 : i32 to index
      %271 = memref.load %arg1[%270] : memref<16xi32, #tpu.memory_space<smem>>
      %c2_i32_80 = arith.constant 2 : i32
      %272 = arith.addi %249, %c2_i32_80 : i32
      %c1_i32_81 = arith.constant 1 : i32
      %c0_i32_82 = arith.constant 0 : i32
      %273 = tpu.memref_slice %arg2[%271, %c0_i32_82] : memref<64x128xf32, #tpu.memory_space<any>> -> memref<1x128xf32, #tpu.memory_space<any>>
      %c0_i32_83 = arith.constant 0 : i32
      %274 = tpu.memref_slice %arg10[%272, %c0_i32_83] : memref<16x128xf32, #tpu.memory_space<vmem>> -> memref<1x128xf32, #tpu.memory_space<vmem>>
      %275 = tpu.memref_slice %arg11[%c1_i32_81] : memref<2x!tpu.dma_semaphore, #tpu.memory_space<semaphore_mem>> -> memref<1x!tpu.dma_semaphore, #tpu.memory_space<semaphore_mem>>
      %276 = tpu.memref_squeeze %275 : memref<1x!tpu.dma_semaphore, #tpu.memory_space<semaphore_mem>> -> memref<!tpu.dma_semaphore, #tpu.memory_space<semaphore_mem>>
      tpu.enqueue_dma source(%273 : memref<1x128xf32, #tpu.memory_space<any>>) target(%274 : memref<1x128xf32, #tpu.memory_space<vmem>>) target_semaphore(%276 : memref<!tpu.dma_semaphore, #tpu.memory_space<semaphore_mem>>)
      %277 = arith.addi %0, %249 : i32
      %c3_i32_84 = arith.constant 3 : i32
      %278 = arith.addi %277, %c3_i32_84 : i32
      %279 = arith.index_cast %278 : i32 to index
      %280 = memref.load %arg1[%279] : memref<16xi32, #tpu.memory_space<smem>>
      %c3_i32_85 = arith.constant 3 : i32
      %281 = arith.addi %249, %c3_i32_85 : i32
      %c1_i32_86 = arith.constant 1 : i32
      %c0_i32_87 = arith.constant 0 : i32
      %282 = tpu.memref_slice %arg2[%280, %c0_i32_87] : memref<64x128xf32, #tpu.memory_space<any>> -> memref<1x128xf32, #tpu.memory_space<any>>
      %c0_i32_88 = arith.constant 0 : i32
      %283 = tpu.memref_slice %arg10[%281, %c0_i32_88] : memref<16x128xf32, #tpu.memory_space<vmem>> -> memref<1x128xf32, #tpu.memory_space<vmem>>
      %284 = tpu.memref_slice %arg11[%c1_i32_86] : memref<2x!tpu.dma_semaphore, #tpu.memory_space<semaphore_mem>> -> memref<1x!tpu.dma_semaphore, #tpu.memory_space<semaphore_mem>>
      %285 = tpu.memref_squeeze %284 : memref<1x!tpu.dma_semaphore, #tpu.memory_space<semaphore_mem>> -> memref<!tpu.dma_semaphore, #tpu.memory_space<semaphore_mem>>
      tpu.enqueue_dma source(%282 : memref<1x128xf32, #tpu.memory_space<any>>) target(%283 : memref<1x128xf32, #tpu.memory_space<vmem>>) target_semaphore(%285 : memref<!tpu.dma_semaphore, #tpu.memory_space<semaphore_mem>>)
    }
    %c2_i32_4 = arith.constant 2 : i32
    %c0 = arith.constant 0 : index
    %c0_5 = arith.constant 0 : index
    %3 = vector.load %arg7[%c0, %c0_5] : memref<1x128xf32, #tpu.memory_space<vmem>>, vector<1x128xf32>
    %c0_6 = arith.constant 0 : index
    %c0_7 = arith.constant 0 : index
    %4 = vector.load %arg8[%c0_6, %c0_7] : memref<1x128xf32, #tpu.memory_space<vmem>>, vector<1x128xf32>
    %c0_8 = arith.constant 0 : index
    %c0_9 = arith.constant 0 : index
    %5 = vector.load %arg5[%c0_8, %c0_9] : memref<16x1xi32, #tpu.memory_space<vmem>>, vector<16x1xi32>
    %c0_10 = arith.constant 0 : index
    %c0_11 = arith.constant 0 : index
    %6 = vector.load %arg3[%c0_10, %c0_11] : memref<2x128xf32, #tpu.memory_space<vmem>>, vector<2x128xf32>
    %cst = arith.constant 0.000000e+00 : f32
    %7 = vector.broadcast %cst : f32 to vector<16x128xf32>
    %c0_i32_12 = arith.constant 0 : i32
    %8 = vector.broadcast %c0_i32_12 : i32 to vector<16x1xi32>
    %9 = arith.cmpi eq, %5, %8 : vector<16x1xi32>
    %10 = vector.extract_strided_slice %6 {offsets = [0, 0], sizes = [1, 128], strides = [1, 1]} : vector<2x128xf32> to vector<1x128xf32>
    %cst_13 = arith.constant 0.000000e+00 : f32
    %11 = vector.shape_cast %9 : vector<16x1xi1> to vector<16x1xi1>
    %12 = vector.broadcast %11 : vector<16x1xi1> to vector<16x128xi1>
    %13 = vector.shape_cast %10 : vector<1x128xf32> to vector<1x128xf32>
    %14 = vector.broadcast %13 : vector<1x128xf32> to vector<16x128xf32>
    %15 = vector.broadcast %cst_13 : f32 to vector<16x128xf32>
    %16 = arith.select %12, %14, %15 : vector<16x128xi1>, vector<16x128xf32>
    %17 = arith.addf %7, %16 : vector<16x128xf32>
    %c1_i32_14 = arith.constant 1 : i32
    %18 = vector.broadcast %c1_i32_14 : i32 to vector<16x1xi32>
    %19 = arith.cmpi eq, %5, %18 : vector<16x1xi32>
    %20 = vector.extract_strided_slice %6 {offsets = [1, 0], sizes = [1, 128], strides = [1, 1]} : vector<2x128xf32> to vector<1x128xf32>
    %cst_15 = arith.constant 0.000000e+00 : f32
    %21 = vector.shape_cast %19 : vector<16x1xi1> to vector<16x1xi1>
    %22 = vector.broadcast %21 : vector<16x1xi1> to vector<16x128xi1>
    %23 = vector.shape_cast %20 : vector<1x128xf32> to vector<1x128xf32>
    %24 = vector.broadcast %23 : vector<1x128xf32> to vector<16x128xf32>
    %25 = vector.broadcast %cst_15 : f32 to vector<16x128xf32>
    %26 = arith.select %22, %24, %25 : vector<16x128xi1>, vector<16x128xf32>
    %27 = arith.addf %17, %26 : vector<16x128xf32>
    %c0_16 = arith.constant 0 : index
    %c0_17 = arith.constant 0 : index
    %28 = vector.load %arg6[%c0_16, %c0_17] : memref<16x1xi32, #tpu.memory_space<vmem>>, vector<16x1xi32>
    %c0_18 = arith.constant 0 : index
    %c0_19 = arith.constant 0 : index
    %29 = vector.load %arg4[%c0_18, %c0_19] : memref<16x128xf32, #tpu.memory_space<vmem>>, vector<16x128xf32>
    %cst_20 = arith.constant 0.000000e+00 : f32
    %30 = vector.broadcast %cst_20 : f32 to vector<16x128xf32>
    %c0_i32_21 = arith.constant 0 : i32
    %31 = vector.broadcast %c0_i32_21 : i32 to vector<16x1xi32>
    %32 = arith.cmpi eq, %28, %31 : vector<16x1xi32>
    %33 = vector.extract_strided_slice %29 {offsets = [0, 0], sizes = [1, 128], strides = [1, 1]} : vector<16x128xf32> to vector<1x128xf32>
    %cst_22 = arith.constant 0.000000e+00 : f32
    %34 = vector.shape_cast %32 : vector<16x1xi1> to vector<16x1xi1>
    %35 = vector.broadcast %34 : vector<16x1xi1> to vector<16x128xi1>
    %36 = vector.shape_cast %33 : vector<1x128xf32> to vector<1x128xf32>
    %37 = vector.broadcast %36 : vector<1x128xf32> to vector<16x128xf32>
    %38 = vector.broadcast %cst_22 : f32 to vector<16x128xf32>
    %39 = arith.select %35, %37, %38 : vector<16x128xi1>, vector<16x128xf32>
    %40 = arith.addf %30, %39 : vector<16x128xf32>
    %c1_i32_23 = arith.constant 1 : i32
    %41 = vector.broadcast %c1_i32_23 : i32 to vector<16x1xi32>
    %42 = arith.cmpi eq, %28, %41 : vector<16x1xi32>
    %43 = vector.extract_strided_slice %29 {offsets = [1, 0], sizes = [1, 128], strides = [1, 1]} : vector<16x128xf32> to vector<1x128xf32>
    %cst_24 = arith.constant 0.000000e+00 : f32
    %44 = vector.shape_cast %42 : vector<16x1xi1> to vector<16x1xi1>
    %45 = vector.broadcast %44 : vector<16x1xi1> to vector<16x128xi1>
    %46 = vector.shape_cast %43 : vector<1x128xf32> to vector<1x128xf32>
    %47 = vector.broadcast %46 : vector<1x128xf32> to vector<16x128xf32>
    %48 = vector.broadcast %cst_24 : f32 to vector<16x128xf32>
    %49 = arith.select %45, %47, %48 : vector<16x128xi1>, vector<16x128xf32>
    %50 = arith.addf %40, %49 : vector<16x128xf32>
    %c2_i32_25 = arith.constant 2 : i32
    %51 = vector.broadcast %c2_i32_25 : i32 to vector<16x1xi32>
    %52 = arith.cmpi eq, %28, %51 : vector<16x1xi32>
    %53 = vector.extract_strided_slice %29 {offsets = [2, 0], sizes = [1, 128], strides = [1, 1]} : vector<16x128xf32> to vector<1x128xf32>
    %cst_26 = arith.constant 0.000000e+00 : f32
    %54 = vector.shape_cast %52 : vector<16x1xi1> to vector<16x1xi1>
    %55 = vector.broadcast %54 : vector<16x1xi1> to vector<16x128xi1>
    %56 = vector.shape_cast %53 : vector<1x128xf32> to vector<1x128xf32>
    %57 = vector.broadcast %56 : vector<1x128xf32> to vector<16x128xf32>
    %58 = vector.broadcast %cst_26 : f32 to vector<16x128xf32>
    %59 = arith.select %55, %57, %58 : vector<16x128xi1>, vector<16x128xf32>
    %60 = arith.addf %50, %59 : vector<16x128xf32>
    %c3_i32 = arith.constant 3 : i32
    %61 = vector.broadcast %c3_i32 : i32 to vector<16x1xi32>
    %62 = arith.cmpi eq, %28, %61 : vector<16x1xi32>
    %63 = vector.extract_strided_slice %29 {offsets = [3, 0], sizes = [1, 128], strides = [1, 1]} : vector<16x128xf32> to vector<1x128xf32>
    %cst_27 = arith.constant 0.000000e+00 : f32
    %64 = vector.shape_cast %62 : vector<16x1xi1> to vector<16x1xi1>
    %65 = vector.broadcast %64 : vector<16x1xi1> to vector<16x128xi1>
    %66 = vector.shape_cast %63 : vector<1x128xf32> to vector<1x128xf32>
    %67 = vector.broadcast %66 : vector<1x128xf32> to vector<16x128xf32>
    %68 = vector.broadcast %cst_27 : f32 to vector<16x128xf32>
    %69 = arith.select %65, %67, %68 : vector<16x128xi1>, vector<16x128xf32>
    %70 = arith.addf %60, %69 : vector<16x128xf32>
    %c4_i32 = arith.constant 4 : i32
    %71 = vector.broadcast %c4_i32 : i32 to vector<16x1xi32>
    %72 = arith.cmpi eq, %28, %71 : vector<16x1xi32>
    %73 = vector.extract_strided_slice %29 {offsets = [4, 0], sizes = [1, 128], strides = [1, 1]} : vector<16x128xf32> to vector<1x128xf32>
    %cst_28 = arith.constant 0.000000e+00 : f32
    %74 = vector.shape_cast %72 : vector<16x1xi1> to vector<16x1xi1>
    %75 = vector.broadcast %74 : vector<16x1xi1> to vector<16x128xi1>
    %76 = vector.shape_cast %73 : vector<1x128xf32> to vector<1x128xf32>
    %77 = vector.broadcast %76 : vector<1x128xf32> to vector<16x128xf32>
    %78 = vector.broadcast %cst_28 : f32 to vector<16x128xf32>
    %79 = arith.select %75, %77, %78 : vector<16x128xi1>, vector<16x128xf32>
    %80 = arith.addf %70, %79 : vector<16x128xf32>
    %c5_i32 = arith.constant 5 : i32
    %81 = vector.broadcast %c5_i32 : i32 to vector<16x1xi32>
    %82 = arith.cmpi eq, %28, %81 : vector<16x1xi32>
    %83 = vector.extract_strided_slice %29 {offsets = [5, 0], sizes = [1, 128], strides = [1, 1]} : vector<16x128xf32> to vector<1x128xf32>
    %cst_29 = arith.constant 0.000000e+00 : f32
    %84 = vector.shape_cast %82 : vector<16x1xi1> to vector<16x1xi1>
    %85 = vector.broadcast %84 : vector<16x1xi1> to vector<16x128xi1>
    %86 = vector.shape_cast %83 : vector<1x128xf32> to vector<1x128xf32>
    %87 = vector.broadcast %86 : vector<1x128xf32> to vector<16x128xf32>
    %88 = vector.broadcast %cst_29 : f32 to vector<16x128xf32>
    %89 = arith.select %85, %87, %88 : vector<16x128xi1>, vector<16x128xf32>
    %90 = arith.addf %80, %89 : vector<16x128xf32>
    %c6_i32 = arith.constant 6 : i32
    %91 = vector.broadcast %c6_i32 : i32 to vector<16x1xi32>
    %92 = arith.cmpi eq, %28, %91 : vector<16x1xi32>
    %93 = vector.extract_strided_slice %29 {offsets = [6, 0], sizes = [1, 128], strides = [1, 1]} : vector<16x128xf32> to vector<1x128xf32>
    %cst_30 = arith.constant 0.000000e+00 : f32
    %94 = vector.shape_cast %92 : vector<16x1xi1> to vector<16x1xi1>
    %95 = vector.broadcast %94 : vector<16x1xi1> to vector<16x128xi1>
    %96 = vector.shape_cast %93 : vector<1x128xf32> to vector<1x128xf32>
    %97 = vector.broadcast %96 : vector<1x128xf32> to vector<16x128xf32>
    %98 = vector.broadcast %cst_30 : f32 to vector<16x128xf32>
    %99 = arith.select %95, %97, %98 : vector<16x128xi1>, vector<16x128xf32>
    %100 = arith.addf %90, %99 : vector<16x128xf32>
    %c7_i32 = arith.constant 7 : i32
    %101 = vector.broadcast %c7_i32 : i32 to vector<16x1xi32>
    %102 = arith.cmpi eq, %28, %101 : vector<16x1xi32>
    %103 = vector.extract_strided_slice %29 {offsets = [7, 0], sizes = [1, 128], strides = [1, 1]} : vector<16x128xf32> to vector<1x128xf32>
    %cst_31 = arith.constant 0.000000e+00 : f32
    %104 = vector.shape_cast %102 : vector<16x1xi1> to vector<16x1xi1>
    %105 = vector.broadcast %104 : vector<16x1xi1> to vector<16x128xi1>
    %106 = vector.shape_cast %103 : vector<1x128xf32> to vector<1x128xf32>
    %107 = vector.broadcast %106 : vector<1x128xf32> to vector<16x128xf32>
    %108 = vector.broadcast %cst_31 : f32 to vector<16x128xf32>
    %109 = arith.select %105, %107, %108 : vector<16x128xi1>, vector<16x128xf32>
    %110 = arith.addf %100, %109 : vector<16x128xf32>
    %c8_i32 = arith.constant 8 : i32
    %111 = vector.broadcast %c8_i32 : i32 to vector<16x1xi32>
    %112 = arith.cmpi eq, %28, %111 : vector<16x1xi32>
    %113 = vector.extract_strided_slice %29 {offsets = [8, 0], sizes = [1, 128], strides = [1, 1]} : vector<16x128xf32> to vector<1x128xf32>
    %cst_32 = arith.constant 0.000000e+00 : f32
    %114 = vector.shape_cast %112 : vector<16x1xi1> to vector<16x1xi1>
    %115 = vector.broadcast %114 : vector<16x1xi1> to vector<16x128xi1>
    %116 = vector.shape_cast %113 : vector<1x128xf32> to vector<1x128xf32>
    %117 = vector.broadcast %116 : vector<1x128xf32> to vector<16x128xf32>
    %118 = vector.broadcast %cst_32 : f32 to vector<16x128xf32>
    %119 = arith.select %115, %117, %118 : vector<16x128xi1>, vector<16x128xf32>
    %120 = arith.addf %110, %119 : vector<16x128xf32>
    %c9_i32 = arith.constant 9 : i32
    %121 = vector.broadcast %c9_i32 : i32 to vector<16x1xi32>
    %122 = arith.cmpi eq, %28, %121 : vector<16x1xi32>
    %123 = vector.extract_strided_slice %29 {offsets = [9, 0], sizes = [1, 128], strides = [1, 1]} : vector<16x128xf32> to vector<1x128xf32>
    %cst_33 = arith.constant 0.000000e+00 : f32
    %124 = vector.shape_cast %122 : vector<16x1xi1> to vector<16x1xi1>
    %125 = vector.broadcast %124 : vector<16x1xi1> to vector<16x128xi1>
    %126 = vector.shape_cast %123 : vector<1x128xf32> to vector<1x128xf32>
    %127 = vector.broadcast %126 : vector<1x128xf32> to vector<16x128xf32>
    %128 = vector.broadcast %cst_33 : f32 to vector<16x128xf32>
    %129 = arith.select %125, %127, %128 : vector<16x128xi1>, vector<16x128xf32>
    %130 = arith.addf %120, %129 : vector<16x128xf32>
    %c10_i32 = arith.constant 10 : i32
    %131 = vector.broadcast %c10_i32 : i32 to vector<16x1xi32>
    %132 = arith.cmpi eq, %28, %131 : vector<16x1xi32>
    %133 = vector.extract_strided_slice %29 {offsets = [10, 0], sizes = [1, 128], strides = [1, 1]} : vector<16x128xf32> to vector<1x128xf32>
    %cst_34 = arith.constant 0.000000e+00 : f32
    %134 = vector.shape_cast %132 : vector<16x1xi1> to vector<16x1xi1>
    %135 = vector.broadcast %134 : vector<16x1xi1> to vector<16x128xi1>
    %136 = vector.shape_cast %133 : vector<1x128xf32> to vector<1x128xf32>
    %137 = vector.broadcast %136 : vector<1x128xf32> to vector<16x128xf32>
    %138 = vector.broadcast %cst_34 : f32 to vector<16x128xf32>
    %139 = arith.select %135, %137, %138 : vector<16x128xi1>, vector<16x128xf32>
    %140 = arith.addf %130, %139 : vector<16x128xf32>
    %c11_i32 = arith.constant 11 : i32
    %141 = vector.broadcast %c11_i32 : i32 to vector<16x1xi32>
    %142 = arith.cmpi eq, %28, %141 : vector<16x1xi32>
    %143 = vector.extract_strided_slice %29 {offsets = [11, 0], sizes = [1, 128], strides = [1, 1]} : vector<16x128xf32> to vector<1x128xf32>
    %cst_35 = arith.constant 0.000000e+00 : f32
    %144 = vector.shape_cast %142 : vector<16x1xi1> to vector<16x1xi1>
    %145 = vector.broadcast %144 : vector<16x1xi1> to vector<16x128xi1>
    %146 = vector.shape_cast %143 : vector<1x128xf32> to vector<1x128xf32>
    %147 = vector.broadcast %146 : vector<1x128xf32> to vector<16x128xf32>
    %148 = vector.broadcast %cst_35 : f32 to vector<16x128xf32>
    %149 = arith.select %145, %147, %148 : vector<16x128xi1>, vector<16x128xf32>
    %150 = arith.addf %140, %149 : vector<16x128xf32>
    %c12_i32 = arith.constant 12 : i32
    %151 = vector.broadcast %c12_i32 : i32 to vector<16x1xi32>
    %152 = arith.cmpi eq, %28, %151 : vector<16x1xi32>
    %153 = vector.extract_strided_slice %29 {offsets = [12, 0], sizes = [1, 128], strides = [1, 1]} : vector<16x128xf32> to vector<1x128xf32>
    %cst_36 = arith.constant 0.000000e+00 : f32
    %154 = vector.shape_cast %152 : vector<16x1xi1> to vector<16x1xi1>
    %155 = vector.broadcast %154 : vector<16x1xi1> to vector<16x128xi1>
    %156 = vector.shape_cast %153 : vector<1x128xf32> to vector<1x128xf32>
    %157 = vector.broadcast %156 : vector<1x128xf32> to vector<16x128xf32>
    %158 = vector.broadcast %cst_36 : f32 to vector<16x128xf32>
    %159 = arith.select %155, %157, %158 : vector<16x128xi1>, vector<16x128xf32>
    %160 = arith.addf %150, %159 : vector<16x128xf32>
    %c13_i32 = arith.constant 13 : i32
    %161 = vector.broadcast %c13_i32 : i32 to vector<16x1xi32>
    %162 = arith.cmpi eq, %28, %161 : vector<16x1xi32>
    %163 = vector.extract_strided_slice %29 {offsets = [13, 0], sizes = [1, 128], strides = [1, 1]} : vector<16x128xf32> to vector<1x128xf32>
    %cst_37 = arith.constant 0.000000e+00 : f32
    %164 = vector.shape_cast %162 : vector<16x1xi1> to vector<16x1xi1>
    %165 = vector.broadcast %164 : vector<16x1xi1> to vector<16x128xi1>
    %166 = vector.shape_cast %163 : vector<1x128xf32> to vector<1x128xf32>
    %167 = vector.broadcast %166 : vector<1x128xf32> to vector<16x128xf32>
    %168 = vector.broadcast %cst_37 : f32 to vector<16x128xf32>
    %169 = arith.select %165, %167, %168 : vector<16x128xi1>, vector<16x128xf32>
    %170 = arith.addf %160, %169 : vector<16x128xf32>
    %c14_i32 = arith.constant 14 : i32
    %171 = vector.broadcast %c14_i32 : i32 to vector<16x1xi32>
    %172 = arith.cmpi eq, %28, %171 : vector<16x1xi32>
    %173 = vector.extract_strided_slice %29 {offsets = [14, 0], sizes = [1, 128], strides = [1, 1]} : vector<16x128xf32> to vector<1x128xf32>
    %cst_38 = arith.constant 0.000000e+00 : f32
    %174 = vector.shape_cast %172 : vector<16x1xi1> to vector<16x1xi1>
    %175 = vector.broadcast %174 : vector<16x1xi1> to vector<16x128xi1>
    %176 = vector.shape_cast %173 : vector<1x128xf32> to vector<1x128xf32>
    %177 = vector.broadcast %176 : vector<1x128xf32> to vector<16x128xf32>
    %178 = vector.broadcast %cst_38 : f32 to vector<16x128xf32>
    %179 = arith.select %175, %177, %178 : vector<16x128xi1>, vector<16x128xf32>
    %180 = arith.addf %170, %179 : vector<16x128xf32>
    %c15_i32 = arith.constant 15 : i32
    %181 = vector.broadcast %c15_i32 : i32 to vector<16x1xi32>
    %182 = arith.cmpi eq, %28, %181 : vector<16x1xi32>
    %183 = vector.extract_strided_slice %29 {offsets = [15, 0], sizes = [1, 128], strides = [1, 1]} : vector<16x128xf32> to vector<1x128xf32>
    %cst_39 = arith.constant 0.000000e+00 : f32
    %184 = vector.shape_cast %182 : vector<16x1xi1> to vector<16x1xi1>
    %185 = vector.broadcast %184 : vector<16x1xi1> to vector<16x128xi1>
    %186 = vector.shape_cast %183 : vector<1x128xf32> to vector<1x128xf32>
    %187 = vector.broadcast %186 : vector<1x128xf32> to vector<16x128xf32>
    %188 = vector.broadcast %cst_39 : f32 to vector<16x128xf32>
    %189 = arith.select %185, %187, %188 : vector<16x128xi1>, vector<16x128xf32>
    %190 = arith.addf %180, %189 : vector<16x128xf32>
    %191 = arith.addf %27, %190 : vector<16x128xf32>
    %c0_i32_40 = arith.constant 0 : i32
    %c0_i32_41 = arith.constant 0 : i32
    %c0_i32_42 = arith.constant 0 : i32
    %192 = tpu.memref_slice %arg10[%c0_i32_41, %c0_i32_42] : memref<16x128xf32, #tpu.memory_space<vmem>> -> memref<8x128xf32, #tpu.memory_space<vmem>>
    %c0_i32_43 = arith.constant 0 : i32
    %c0_i32_44 = arith.constant 0 : i32
    %193 = tpu.memref_slice %arg10[%c0_i32_43, %c0_i32_44] : memref<16x128xf32, #tpu.memory_space<vmem>> -> memref<8x128xf32, #tpu.memory_space<vmem>>
    %194 = tpu.memref_slice %arg11[%c0_i32_40] : memref<2x!tpu.dma_semaphore, #tpu.memory_space<semaphore_mem>> -> memref<1x!tpu.dma_semaphore, #tpu.memory_space<semaphore_mem>>
    %195 = tpu.memref_squeeze %194 : memref<1x!tpu.dma_semaphore, #tpu.memory_space<semaphore_mem>> -> memref<!tpu.dma_semaphore, #tpu.memory_space<semaphore_mem>>
    tpu.wait_dma2 semaphore(%195 : memref<!tpu.dma_semaphore, #tpu.memory_space<semaphore_mem>>) src(%192 : memref<8x128xf32, #tpu.memory_space<vmem>>) dst(%193 : memref<8x128xf32, #tpu.memory_space<vmem>>)
    %c0_45 = arith.constant 0 : index
    %c0_46 = arith.constant 0 : index
    %196 = vector.load %arg10[%c0_45, %c0_46] : memref<16x128xf32, #tpu.memory_space<vmem>>, vector<8x128xf32>
    %197 = vector.extract_strided_slice %191 {offsets = [0, 0], sizes = [8, 128], strides = [1, 1]} : vector<16x128xf32> to vector<8x128xf32>
    %198 = arith.addf %196, %197 : vector<8x128xf32>
    %cst_47 = arith.constant dense<0.000000e+00> : vector<8xf32>
    %199 = vector.multi_reduction <add>, %198, %cst_47 [1] : vector<8x128xf32> to vector<8xf32>
    %200 = vector.shape_cast %199 : vector<8xf32> to vector<8x1xf32>
    %cst_48 = arith.constant 1.280000e+02 : f32
    %201 = vector.broadcast %cst_48 : f32 to vector<8x1xf32>
    %202 = arith.divf %200, %201 : vector<8x1xf32>
    %203 = vector.broadcast %202 : vector<8x1xf32> to vector<8x128xf32>
    %204 = arith.subf %198, %203 : vector<8x128xf32>
    %205 = arith.mulf %204, %204 : vector<8x128xf32>
    %cst_49 = arith.constant dense<0.000000e+00> : vector<8xf32>
    %206 = vector.multi_reduction <add>, %205, %cst_49 [1] : vector<8x128xf32> to vector<8xf32>
    %207 = vector.shape_cast %206 : vector<8xf32> to vector<8x1xf32>
    %cst_50 = arith.constant 1.280000e+02 : f32
    %208 = vector.broadcast %cst_50 : f32 to vector<8x1xf32>
    %209 = arith.divf %207, %208 : vector<8x1xf32>
    %cst_51 = arith.constant 9.99999996E-13 : f32
    %210 = vector.broadcast %cst_51 : f32 to vector<8x1xf32>
    %211 = arith.addf %209, %210 : vector<8x1xf32>
    %212 = math.rsqrt %211 : vector<8x1xf32>
    %213 = vector.broadcast %212 : vector<8x1xf32> to vector<8x128xf32>
    %214 = arith.mulf %204, %213 : vector<8x128xf32>
    %215 = vector.broadcast %3 : vector<1x128xf32> to vector<8x128xf32>
    %216 = arith.mulf %214, %215 : vector<8x128xf32>
    %217 = vector.broadcast %4 : vector<1x128xf32> to vector<8x128xf32>
    %218 = arith.addf %216, %217 : vector<8x128xf32>
    %c0_52 = arith.constant 0 : index
    %c0_53 = arith.constant 0 : index
    %219 = vector.load %arg9[%c0_52, %c0_53] : memref<16x128xf32, #tpu.memory_space<vmem>>, vector<8x128xf32>
    tpu.vector_store %arg9[%c0_52, %c0_53], %218 {strides = array<i32>} : memref<16x128xf32, #tpu.memory_space<vmem>>, vector<8x128xf32>,
    %c1_i32_54 = arith.constant 1 : i32
    %c8_i32_55 = arith.constant 8 : i32
    %c0_i32_56 = arith.constant 0 : i32
    %220 = tpu.memref_slice %arg10[%c8_i32_55, %c0_i32_56] : memref<16x128xf32, #tpu.memory_space<vmem>> -> memref<8x128xf32, #tpu.memory_space<vmem>>
    %c8_i32_57 = arith.constant 8 : i32
    %c0_i32_58 = arith.constant 0 : i32
    %221 = tpu.memref_slice %arg10[%c8_i32_57, %c0_i32_58] : memref<16x128xf32, #tpu.memory_space<vmem>> -> memref<8x128xf32, #tpu.memory_space<vmem>>
    %222 = tpu.memref_slice %arg11[%c1_i32_54] : memref<2x!tpu.dma_semaphore, #tpu.memory_space<semaphore_mem>> -> memref<1x!tpu.dma_semaphore, #tpu.memory_space<semaphore_mem>>
    %223 = tpu.memref_squeeze %222 : memref<1x!tpu.dma_semaphore, #tpu.memory_space<semaphore_mem>> -> memref<!tpu.dma_semaphore, #tpu.memory_space<semaphore_mem>>
    tpu.wait_dma2 semaphore(%223 : memref<!tpu.dma_semaphore, #tpu.memory_space<semaphore_mem>>) src(%220 : memref<8x128xf32, #tpu.memory_space<vmem>>) dst(%221 : memref<8x128xf32, #tpu.memory_space<vmem>>)
    %c8 = arith.constant 8 : index
    %c0_59 = arith.constant 0 : index
    %224 = vector.load %arg10[%c8, %c0_59] : memref<16x128xf32, #tpu.memory_space<vmem>>, vector<8x128xf32>
    %225 = vector.extract_strided_slice %191 {offsets = [8, 0], sizes = [8, 128], strides = [1, 1]} : vector<16x128xf32> to vector<8x128xf32>
    %226 = arith.addf %224, %225 : vector<8x128xf32>
    %cst_60 = arith.constant dense<0.000000e+00> : vector<8xf32>
    %227 = vector.multi_reduction <add>, %226, %cst_60 [1] : vector<8x128xf32> to vector<8xf32>
    %228 = vector.shape_cast %227 : vector<8xf32> to vector<8x1xf32>
    %cst_61 = arith.constant 1.280000e+02 : f32
    %229 = vector.broadcast %cst_61 : f32 to vector<8x1xf32>
    %230 = arith.divf %228, %229 : vector<8x1xf32>
    %231 = vector.broadcast %230 : vector<8x1xf32> to vector<8x128xf32>
    %232 = arith.subf %226, %231 : vector<8x128xf32>
    %233 = arith.mulf %232, %232 : vector<8x128xf32>
    %cst_62 = arith.constant dense<0.000000e+00> : vector<8xf32>
    %234 = vector.multi_reduction <add>, %233, %cst_62 [1] : vector<8x128xf32> to vector<8xf32>
    %235 = vector.shape_cast %234 : vector<8xf32> to vector<8x1xf32>
    %cst_63 = arith.constant 1.280000e+02 : f32
    %236 = vector.broadcast %cst_63 : f32 to vector<8x1xf32>
    %237 = arith.divf %235, %236 : vector<8x1xf32>
    %cst_64 = arith.constant 9.99999996E-13 : f32
    %238 = vector.broadcast %cst_64 : f32 to vector<8x1xf32>
    %239 = arith.addf %237, %238 : vector<8x1xf32>
    %240 = math.rsqrt %239 : vector<8x1xf32>
    %241 = vector.broadcast %240 : vector<8x1xf32> to vector<8x128xf32>
    %242 = arith.mulf %232, %241 : vector<8x128xf32>
    %243 = vector.broadcast %3 : vector<1x128xf32> to vector<8x128xf32>
    %244 = arith.mulf %242, %243 : vector<8x128xf32>
    %245 = vector.broadcast %4 : vector<1x128xf32> to vector<8x128xf32>
    %246 = arith.addf %244, %245 : vector<8x128xf32>
    %c8_65 = arith.constant 8 : index
    %c0_66 = arith.constant 0 : index
    %247 = vector.load %arg9[%c8_65, %c0_66] : memref<16x128xf32, #tpu.memory_space<vmem>>, vector<8x128xf32>
    tpu.vector_store %arg9[%c8_65, %c0_66], %246 {strides = array<i32>} : memref<16x128xf32, #tpu.memory_space<vmem>>, vector<8x128xf32>,
    return
  }
  func.func @transform_1(%arg0: i32, %arg1: memref<16xi32, #tpu.memory_space<smem>>) -> (i32, i32) {
    %c0_i32 = arith.constant 0 : i32
    %c0_i32_0 = arith.constant 0 : i32
    %c0_i32_1 = arith.constant 0 : i32
    return %c0_i32, %c0_i32_0 : i32, i32
  }
  func.func @transform_2(%arg0: i32, %arg1: memref<16xi32, #tpu.memory_space<smem>>) -> (i32, i32) {
    %c0_i32 = arith.constant 0 : i32
    %c0_i32_0 = arith.constant 0 : i32
    %c0_i32_1 = arith.constant 0 : i32
    return %c0_i32, %c0_i32_0 : i32, i32
  }
  func.func @transform_3(%arg0: i32, %arg1: memref<16xi32, #tpu.memory_space<smem>>) -> (i32, i32) {
    %c0_i32 = arith.constant 0 : i32
    %c0_i32_0 = arith.constant 0 : i32
    return %arg0, %c0_i32 : i32, i32
  }
  func.func @transform_4(%arg0: i32, %arg1: memref<16xi32, #tpu.memory_space<smem>>) -> (i32, i32) {
    %c0_i32 = arith.constant 0 : i32
    %c0_i32_0 = arith.constant 0 : i32
    return %arg0, %c0_i32 : i32, i32
  }
  func.func @transform_5(%arg0: i32, %arg1: memref<16xi32, #tpu.memory_space<smem>>) -> (i32, i32) {
    %c0_i32 = arith.constant 0 : i32
    %c0_i32_0 = arith.constant 0 : i32
    %c0_i32_1 = arith.constant 0 : i32
    return %c0_i32, %c0_i32_0 : i32, i32
  }
  func.func @transform_6(%arg0: i32, %arg1: memref<16xi32, #tpu.memory_space<smem>>) -> (i32, i32) {
    %c0_i32 = arith.constant 0 : i32
    %c0_i32_0 = arith.constant 0 : i32
    %c0_i32_1 = arith.constant 0 : i32
    return %c0_i32, %c0_i32_0 : i32, i32
  }
  func.func @transform_7(%arg0: i32, %arg1: memref<16xi32, #tpu.memory_space<smem>>) -> (i32, i32) {
    %c0_i32 = arith.constant 0 : i32
    %c0_i32_0 = arith.constant 0 : i32
    return %arg0, %c0_i32 : i32, i32
  }
}

</mosaic_0001>

<bundles_post_ra>
// kernel: _bert_embeddings_impl.1
= control target key start
LH: loop header
LB: loop body
LE: loop exit
PB: predicated region body
PF: predicated region fallthrough
CT: control target
= control target key end

     0   :  { %s1395_s0 = inlined_call_operand.vmem [shape: s32[16], index: 0, kind: input, shape index: {}]   ;;  %s1396_s1 = inlined_call_operand.hbm [shape: f32[64,128], index: 1, kind: input, shape index: {}]   ;;  %s1397_s2 = inlined_call_operand.vmem [shape: f32[2,128], index: 2, kind: input, shape index: {}]   ;;  %s1398_s3 = inlined_call_operand.vmem [shape: f32[16,128], index: 3, kind: input, shape index: {}]   ;;  %s1399_s4 = inlined_call_operand.vmem [shape: s32[16,1], index: 4, kind: input, shape index: {}]   ;;  %s1400_s5 = inlined_call_operand.vmem [shape: s32[16,1], index: 5, kind: input, shape index: {}]   ;;  %s1401_s6 = inlined_call_operand.vmem [shape: f32[1,128], index: 6, kind: input, shape index: {}]   ;;  %s1402_s7 = inlined_call_operand.vmem [shape: f32[1,128], index: 7, kind: input, shape index: {}]   ;;  %s1403_s8 = inlined_call_operand.hbm [shape: f32[16,128], index: 8, kind: output, shape index: {}]  }
   0x1   :  { %s13_s29 = sshll.u32 %s1395_s0, 4  ;;  %s14_s29 = int_to_ptr.vmem [resolvable:$true] %s13_s29 }
   0x2   :  { %s731_s30 = scalar_lea.vmem %s14_s29, 16  ;;  %p736_p1 = scmp.lt.s32.totalorder %s14_s29, %s14_s29 }
   0x3   :  { %p732_p0 = scmp.ne.s32.totalorder %s14_s29, %s731_s30  ;;  %p737_p2 = scmp.lt.s32.totalorder %s731_s30, %s731_s30 }
   0x5   :  { %p738_p3 = por %p737_p2, %p736_p1 }
   0x7   :  { %p739_p4 = pnand %p738_p3, %p732_p0 }
   0x9   :  { %742 = shalt.err (!%p739_p4)  }
   0xa   :  { %s981_s9 = smov [#allocation5]  }
   0xb   :  { %16 = dma.vmem_to_smem %s14_s29, 16, %s981_s9, [#allocation4] }
   0xc   :  { %965 = dma.done.wait [#allocation4], 16 }
   0xd   :  { %966 = vsyncadd [#allocation4], 4294967280 }
   0xe   :  { %18 = sfence }
   0xf   :  { %19 = vsyncpa [#allocation7], 0  ;;  %s1035_s10 = smov 0  }
  0x10 LB: > { %s1041_s0 = sshll.u32 %s975_s10, 2  ;;  %s1068_s29 = scalar_lea.hbm %s1396_s1, 1024  ;;  %s975_s10 = sphi %s1035_s10, %s38_s10  }
  0x11   : > { %s41_s11 = sld [smem:[#allocation5 + %s1041_s0]]  ;;  %s1045_s12 = scalar_lea.vmem [#allocation2], %s1041_s0 }
  0x12   : > { %s52_s13 = sshll.u32 %s1045_s12, 4  ;;  %s56_s14 = sadd.s32 1, %s1041_s0  ;;  %s1049_s13 = int_to_ptr.vmem [resolvable:$true] %s52_s13 }
  0x13   : > { %s1051_s15 = sld [smem:[#allocation5 + %s56_s14]]  ;;  %s642_s16 = scalar_lea.vmem %s1045_s12, 1 [#allocation2] }
  0x14   : > { %s73_s17 = sadd.s32 2, %s1041_s0  ;;  %s69_s18 = sshll.u32 %s642_s16, 4  ;;  %s1057_s18 = int_to_ptr.vmem [resolvable:$true] %s69_s18 }
  0x15   : > { %s1055_s19 = sld [smem:[#allocation5 + %s73_s17]]  ;;  %s647_s20 = scalar_lea.vmem %s1045_s12, 2 [#allocation2] }
  0x16   : > { %s86_s22 = sshll.u32 %s647_s20, 4  ;;  %s1063_s22 = int_to_ptr.vmem [resolvable:$true] %s86_s22 }
  0x17   : > { %s684_s21 = sshll.u32 %s41_s11, 4 }
  0x18   : > { %s43_s25 = scalar_lea.hbm %s1396_s1, %s684_s21 }
  0x19   : > { %s743_s26 = scalar_lea.hbm %s43_s25, 16  ;;  %p746_p6 = scmp.lt.u32.totalorder %s43_s25, %s1396_s1 }
  0x1a   : > { %p744_p5 = scmp.ne.s32.totalorder %s43_s25, %s743_s26  ;;  %p747_p7 = scmp.lt.u32.totalorder %s1068_s29, %s743_s26 }
  0x1b   : > { %p749_p9 = scmp.lt.u32.totalorder %s743_s26, %s43_s25 }
  0x1c   : > { %p748_p8 = por %p747_p7, %p746_p6 }
  0x1e   : > { %p750_p10 = por %p749_p9, %p748_p8 }
  0x20   : > { %p751_p11 = pnand %p750_p10, %p744_p5 }
  0x22   : > { %754 = shalt.err (!%p751_p11)  }
  0x23   : > { %s755_s11 = scalar_lea.vmem %s1049_s13, 16  ;;  %s982_s14 = smov [#allocation2]  }
  0x24   : > { %p756_p12 = scmp.ne.s32.totalorder %s1049_s13, %s755_s11  ;;  %s757_s16 = sshll.u32 %s982_s14, 4  ;;  %s1076_s16 = int_to_ptr.vmem [resolvable:$false] %s757_s16 }
  0x25   : > { %s1079_s17 = scalar_lea.vmem %s1076_s16, 256  ;;  %p760_p13 = scmp.lt.s32.totalorder %s1049_s13, %s1076_s16 }
  0x26   : > { %p761_p0 = scmp.lt.s32.totalorder %s1079_s17, %s755_s11 }
  0x28   : > { %p762_p1 = por %p761_p0, %p760_p13 }
  0x2a   : > { %p763_p2 = pnand %p762_p1, %p756_p12 }
  0x2c   : > { %766 = shalt.err (!%p763_p2)  }
  0x2d   : > { %55 = dma.hbm_to_vmem [thread:$0]  %s43_s25, 16, %s1049_s13, [#allocation3] }
  0x2e   : > { %s685_s20 = sshll.u32 %s1051_s15, 4  ;;  %s90_s21 = sadd.s32 3, %s1041_s0 }
  0x2f   : > { %s60_s26 = scalar_lea.hbm %s1396_s1, %s685_s20  ;;  %s687_s27 = sshll.u32 %s1055_s19, 4 }
  0x30   : > { %s767_s28 = scalar_lea.hbm %s60_s26, 16  ;;  %p770_p4 = scmp.lt.u32.totalorder %s60_s26, %s1396_s1 }
  0x31   : > { %p768_p3 = scmp.ne.s32.totalorder %s60_s26, %s767_s28  ;;  %p771_p5 = scmp.lt.u32.totalorder %s1068_s29, %s767_s28 }
  0x32   : > { %p773_p7 = scmp.lt.u32.totalorder %s767_s28, %s60_s26 }
  0x33   : > { %p772_p6 = por %p771_p5, %p770_p4 }
  0x35   : > { %p774_p8 = por %p773_p7, %p772_p6 }
  0x37   : > { %p775_p9 = pnand %p774_p8, %p768_p3 }
  0x39   : > { %778 = shalt.err (!%p775_p9)  }
  0x3a   : > { %s779_s0 = scalar_lea.vmem %s1057_s18, 16  ;;  %p784_p11 = scmp.lt.s32.totalorder %s1057_s18, %s1076_s16 }
  0x3b   : > { %p780_p10 = scmp.ne.s32.totalorder %s1057_s18, %s779_s0  ;;  %p785_p12 = scmp.lt.s32.totalorder %s1079_s17, %s779_s0 }
  0x3d   : > { %p786_p13 = por %p785_p12, %p784_p11 }
  0x3f   : > { %p787_p0 = pnand %p786_p13, %p780_p10 }
  0x41   : > { %790 = shalt.err (!%p787_p0)  }
  0x42   : > { %72 = dma.hbm_to_vmem [thread:$0]  %s60_s26, 16, %s1057_s18, [#allocation3] }
  0x43   : > { %s77_s19 = scalar_lea.hbm %s1396_s1, %s687_s27  ;;  %s91_s25 = sld [smem:[#allocation5 + %s90_s21]] }
  0x44   : > { %s791_s11 = scalar_lea.hbm %s77_s19, 16  ;;  %p794_p2 = scmp.lt.u32.totalorder %s77_s19, %s1396_s1 }
  0x45   : > { %p792_p1 = scmp.ne.s32.totalorder %s77_s19, %s791_s11  ;;  %p795_p3 = scmp.lt.u32.totalorder %s1068_s29, %s791_s11 }
  0x46   : > { %p797_p5 = scmp.lt.u32.totalorder %s791_s11, %s77_s19 }
  0x47   : > { %p796_p4 = por %p795_p3, %p794_p2 }
  0x49   : > { %p798_p6 = por %p797_p5, %p796_p4 }
  0x4b   : > { %p799_p7 = pnand %p798_p6, %p792_p1 }
  0x4d   : > { %802 = shalt.err (!%p799_p7)  }
  0x4e   : > { %s803_s18 = scalar_lea.vmem %s1063_s22, 16  ;;  %p808_p9 = scmp.lt.s32.totalorder %s1063_s22, %s1076_s16 }
  0x4f   : > { %p804_p8 = scmp.ne.s32.totalorder %s1063_s22, %s803_s18  ;;  %p809_p10 = scmp.lt.s32.totalorder %s1079_s17, %s803_s18 }
  0x51   : > { %p810_p11 = por %p809_p10, %p808_p9 }
  0x53   : > { %p811_p12 = pnand %p810_p11, %p804_p8 }
  0x55   : > { %814 = shalt.err (!%p811_p12)  }
  0x56   : > { %89 = dma.hbm_to_vmem [thread:$0]  %s77_s19, 16, %s1063_s22, [#allocation3] }
  0x57   : > { %s652_s21 = scalar_lea.vmem %s1045_s12, 3 [#allocation2]  ;;  %s689_s24 = sshll.u32 %s91_s25, 4 }
  0x58   : > { %s103_s23 = sshll.u32 %s652_s21, 4  ;;  %s94_s28 = scalar_lea.hbm %s1396_s1, %s689_s24  ;;  %s104_s23 = int_to_ptr.vmem [resolvable:$true] %s103_s23 }
  0x59   : > { %s815_s30 = scalar_lea.hbm %s94_s28, 16  ;;  %p818_p0 = scmp.lt.u32.totalorder %s94_s28, %s1396_s1 }
  0x5a   : > { %p816_p13 = scmp.ne.s32.totalorder %s94_s28, %s815_s30  ;;  %p819_p1 = scmp.lt.u32.totalorder %s1068_s29, %s815_s30 }
  0x5b   : > { %p821_p3 = scmp.lt.u32.totalorder %s815_s30, %s94_s28 }
  0x5c   : > { %p820_p2 = por %p819_p1, %p818_p0 }
  0x5e   : > { %p822_p4 = por %p821_p3, %p820_p2 }
  0x60   : > { %p823_p5 = pnand %p822_p4, %p816_p13 }
  0x62   : > { %826 = shalt.err (!%p823_p5)  }
  0x63   : > { %s827_s12 = scalar_lea.vmem %s104_s23, 16  ;;  %p832_p7 = scmp.lt.s32.totalorder %s104_s23, %s1076_s16 }
  0x64   : > { %p828_p6 = scmp.ne.s32.totalorder %s104_s23, %s827_s12  ;;  %p833_p8 = scmp.lt.s32.totalorder %s1079_s17, %s827_s12 }
  0x66   : > { %p834_p9 = por %p833_p8, %p832_p7 }
  0x68   : > { %p835_p10 = pnand %p834_p9, %p828_p6 }
  0x6a   : > { %838 = shalt.err (!%p835_p10)  }
  0x6b   : > { %106 = dma.hbm_to_vmem [thread:$0]  %s94_s28, 16, %s104_s23, [#allocation3] }
  0x6c   : > { %s38_s10 = sadd.s32 1, %s975_s10  }
  0x6d   : > { %p35_p11 = scmp.ge.s32.totalorder %s38_s10, 2  }
  0x6e   :  { %s1127_s22 = smov (%p35_p11), 0  }
  0x6f   :  { %37 = sbr.rel (!%p35_p11) target bundleno = 16 (0x10), region = 109 }
  0x76 LB: > { %s691_s13 = sshll.u32 %s979_s22, 2  ;;  %s979_s22 = sphi %s1127_s22, %s112_s22  }
  0x77   : > { %s1133_s15 = sadd.s32 8, %s691_s13  ;;  %s1136_s25 = scalar_lea.vmem [#allocation2], %s691_s13 }
  0x78   : > { %s116_s19 = sld [smem:[#allocation5 + %s1133_s15]]  ;;  %s657_s10 = scalar_lea.vmem %s1136_s25, 8 [#allocation2] }
  0x79   : > { %s128_s11 = sshll.u32 %s657_s10, 4  ;;  %s132_s14 = sadd.s32 1, %s1133_s15  ;;  %s129_s11 = int_to_ptr.vmem [resolvable:$true] %s128_s11 }
  0x7a   : > { %s1140_s20 = sld [smem:[#allocation5 + %s132_s14]]  ;;  %s662_s18 = scalar_lea.vmem %s1136_s25, 9 [#allocation2] }
  0x7b   : > { %s149_s21 = sadd.s32 2, %s1133_s15  ;;  %s145_s23 = sshll.u32 %s662_s18, 4  ;;  %s1146_s23 = int_to_ptr.vmem [resolvable:$true] %s145_s23 }
  0x7c   : > { %s1144_s24 = sld [smem:[#allocation5 + %s149_s21]]  ;;  %s667_s26 = scalar_lea.vmem %s1136_s25, 10 [#allocation2] }
  0x7d   : > { %s162_s28 = sshll.u32 %s667_s26, 4  ;;  %s1152_s28 = int_to_ptr.vmem [resolvable:$true] %s162_s28 }
  0x7e   : > { %s692_s27 = sshll.u32 %s116_s19, 4 }
  0x7f   : > { %s118_s0 = scalar_lea.hbm %s1396_s1, %s692_s27 }
  0x80   : > { %s839_s12 = scalar_lea.hbm %s118_s0, 16  ;;  %p842_p13 = scmp.lt.u32.totalorder %s118_s0, %s1396_s1 }
  0x81   : > { %p840_p12 = scmp.ne.s32.totalorder %s118_s0, %s839_s12  ;;  %p843_p0 = scmp.lt.u32.totalorder %s1068_s29, %s839_s12 }
  0x82   : > { %p845_p2 = scmp.lt.u32.totalorder %s839_s12, %s118_s0 }
  0x83   : > { %p844_p1 = por %p843_p0, %p842_p13 }
  0x85   : > { %p846_p3 = por %p845_p2, %p844_p1 }
  0x87   : > { %p847_p4 = pnand %p846_p3, %p840_p12 }
  0x89   : > { %850 = shalt.err (!%p847_p4)  }
  0x8a   : > { %s851_s19 = scalar_lea.vmem %s129_s11, 16  ;;  %p856_p6 = scmp.lt.s32.totalorder %s129_s11, %s1076_s16 }
  0x8b   : > { %p852_p5 = scmp.ne.s32.totalorder %s129_s11, %s851_s19  ;;  %p857_p7 = scmp.lt.s32.totalorder %s1079_s17, %s851_s19 }
  0x8d   : > { %p858_p8 = por %p857_p7, %p856_p6 }
  0x8f   : > { %p859_p9 = pnand %p858_p8, %p852_p5 }
  0x91   : > { %862 = shalt.err (!%p859_p9)  }
  0x92   : > { %131 = dma.hbm_to_vmem [thread:$0]  %s118_s0, 16, %s129_s11, [#allocation3 + $0x1] }
  0x93   : > { %s694_s14 = sshll.u32 %s1140_s20, 4  ;;  %s166_s18 = sadd.s32 3, %s1133_s15 }
  0x94   : > { %s136_s27 = scalar_lea.hbm %s1396_s1, %s694_s14  ;;  %s696_s30 = sshll.u32 %s1144_s24, 4 }
  0x95   : > { %s863_s9 = scalar_lea.hbm %s136_s27, 16  ;;  %p866_p11 = scmp.lt.u32.totalorder %s136_s27, %s1396_s1 }
  0x96   : > { %p864_p10 = scmp.ne.s32.totalorder %s136_s27, %s863_s9  ;;  %p867_p12 = scmp.lt.u32.totalorder %s1068_s29, %s863_s9 }
  0x97   : > { %p869_p0 = scmp.lt.u32.totalorder %s863_s9, %s136_s27 }
  0x98   : > { %p868_p13 = por %p867_p12, %p866_p11 }
  0x9a   : > { %p870_p1 = por %p869_p0, %p868_p13 }
  0x9c   : > { %p871_p2 = pnand %p870_p1, %p864_p10 }
  0x9e   : > { %874 = shalt.err (!%p871_p2)  }
  0x9f   : > { %s875_s15 = scalar_lea.vmem %s1146_s23, 16  ;;  %p880_p4 = scmp.lt.s32.totalorder %s1146_s23, %s1076_s16 }
  0xa0   : > { %p876_p3 = scmp.ne.s32.totalorder %s1146_s23, %s875_s15  ;;  %p881_p5 = scmp.lt.s32.totalorder %s1079_s17, %s875_s15 }
  0xa2   : > { %p882_p6 = por %p881_p5, %p880_p4 }
  0xa4   : > { %p883_p7 = pnand %p882_p6, %p876_p3 }
  0xa6   : > { %886 = shalt.err (!%p883_p7)  }
  0xa7   : > { %148 = dma.hbm_to_vmem [thread:$0]  %s136_s27, 16, %s1146_s23, [#allocation3 + $0x1] }
  0xa8   : > { %s153_s24 = scalar_lea.hbm %s1396_s1, %s696_s30  ;;  %s167_s0 = sld [smem:[#allocation5 + %s166_s18]] }
  0xa9   : > { %s887_s10 = scalar_lea.hbm %s153_s24, 16  ;;  %p890_p9 = scmp.lt.u32.totalorder %s153_s24, %s1396_s1 }
  0xaa   : > { %p888_p8 = scmp.ne.s32.totalorder %s153_s24, %s887_s10  ;;  %p891_p10 = scmp.lt.u32.totalorder %s1068_s29, %s887_s10 }
  0xab   : > { %p893_p12 = scmp.lt.u32.totalorder %s887_s10, %s153_s24 }
  0xac   : > { %p892_p11 = por %p891_p10, %p890_p9 }
  0xae   : > { %p894_p13 = por %p893_p12, %p892_p11 }
  0xb0   : > { %p895_p0 = pnand %p894_p13, %p888_p8 }
  0xb2   : > { %898 = shalt.err (!%p895_p0)  }
  0xb3   : > { %s899_s23 = scalar_lea.vmem %s1152_s28, 16  ;;  %p904_p2 = scmp.lt.s32.totalorder %s1152_s28, %s1076_s16 }
  0xb4   : > { %p900_p1 = scmp.ne.s32.totalorder %s1152_s28, %s899_s23  ;;  %p905_p3 = scmp.lt.s32.totalorder %s1079_s17, %s899_s23 }
  0xb6   : > { %p906_p4 = por %p905_p3, %p904_p2 }
  0xb8   : > { %p907_p5 = pnand %p906_p4, %p900_p1 }
  0xba   : > { %910 = shalt.err (!%p907_p5)  }
  0xbb   : > { %165 = dma.hbm_to_vmem [thread:$0]  %s153_s24, 16, %s1152_s28, [#allocation3 + $0x1] }
  0xbc   : > { %s672_s18 = scalar_lea.vmem %s1136_s25, 11 [#allocation2]  ;;  %s698_s26 = sshll.u32 %s167_s0, 4 }
  0xbd   : > { %s179_s21 = sshll.u32 %s672_s18, 4  ;;  %s170_s9 = scalar_lea.hbm %s1396_s1, %s698_s26  ;;  %s180_s21 = int_to_ptr.vmem [resolvable:$true] %s179_s21 }
  0xbe   : > { %s911_s12 = scalar_lea.hbm %s170_s9, 16  ;;  %p914_p7 = scmp.lt.u32.totalorder %s170_s9, %s1396_s1 }
  0xbf   : > { %p912_p6 = scmp.ne.s32.totalorder %s170_s9, %s911_s12  ;;  %p915_p8 = scmp.lt.u32.totalorder %s1068_s29, %s911_s12 }
  0xc0   : > { %p917_p10 = scmp.lt.u32.totalorder %s911_s12, %s170_s9 }
  0xc1   : > { %p916_p9 = por %p915_p8, %p914_p7 }
  0xc3   : > { %p918_p11 = por %p917_p10, %p916_p9 }
  0xc5   : > { %p919_p12 = pnand %p918_p11, %p912_p6 }
  0xc7   : > { %922 = shalt.err (!%p919_p12)  }
  0xc8   : > { %s923_s25 = scalar_lea.vmem %s180_s21, 16  ;;  %p928_p0 = scmp.lt.s32.totalorder %s180_s21, %s1076_s16 }
  0xc9   : > { %p924_p13 = scmp.ne.s32.totalorder %s180_s21, %s923_s25  ;;  %p929_p1 = scmp.lt.s32.totalorder %s1079_s17, %s923_s25 }
  0xcb   : > { %p930_p2 = por %p929_p1, %p928_p0 }
  0xcd   : > { %p931_p3 = pnand %p930_p2, %p924_p13 }
  0xcf   : > { %934 = shalt.err (!%p931_p3)  }
  0xd0   : > { %182 = dma.hbm_to_vmem [thread:$0]  %s170_s9, 16, %s180_s21, [#allocation3 + $0x1] }
  0xd1   : > { %s112_s22 = sadd.s32 1, %s979_s22  }
  0xd2   : > { %p109_p4 = scmp.ge.s32.totalorder %s112_s22, 2  }
  0xd3   :  { %v185_v0 = vld [vmem:[%s1399_s4] sm:$0xff] (%p109_p4)  ;;  %v186_v1 = vld [vmem:[%s1399_s4 + $0x8] sm:$0xff] (%p109_p4)  ;;  %v983_v2 = vmov (%p109_p4), 0   ;;  %v200_v43 = vlaneseq (%p109_p4) }
  0xd4   :  { %111 = sbr.rel (!%p109_p4) target bundleno = 118 (0x76), region = 120  ;;  %726 = vset.pattern.permute.xlu1 (%p109_p4), %v983_v2  ;;  %725 = vset.pattern.permute.xlu0 (%p109_p4), %v983_v2  ;;  %vm208_vm0 = vcmp.eq.s32.totalorder (%p109_p4), %v185_v0, 1  ;;  %vm188_vm1 = vcmp.eq.s32.totalorder (%p109_p4), %v185_v0, 0  ;;  %vm209_vm2 = vcmp.eq.s32.totalorder (%p109_p4), %v186_v1, 1  ;;  %vm189_vm3 = vcmp.eq.s32.totalorder (%p109_p4), %v186_v1, 0  ;;  %v1215_v5 = vld [vmem:[%s1400_s5 + $0x8] sm:$0xff] (%p109_p4) }
  0xd5   :  { %v210_v3 = vsel (%p109_p4), %vm208_vm0, 1, %v983_v2  ;;  %v190_v4 = vsel (%p109_p4), %vm188_vm1, 1, %v983_v2  ;;  %v1220_v6 = vld [vmem:[%s1400_s5] sm:$0xff] (%p109_p4)  ;;  %v211_v7 = vsel (%p109_p4), %vm209_vm2, 1, %v983_v2  ;;  %v191_v8 = vsel (%p109_p4), %vm189_vm3, 1, %v983_v2 }
  0xd6   :  { %213 = vperm.xlu1 (%p109_p4), %726, %v210_v3   ;;  %193 = vperm.xlu0 (%p109_p4), %725, %v190_v4   ;;  %vm233_vm4 = vcmp.eq.s32.totalorder (%p109_p4), %v1215_v5, 0  ;;  %vm232_vm5 = vcmp.eq.s32.totalorder (%p109_p4), %v1220_v6, 0  ;;  %vm253_vm6 = vcmp.eq.s32.totalorder (%p109_p4), %v1215_v5, 1  ;;  %vm252_vm7 = vcmp.eq.s32.totalorder (%p109_p4), %v1220_v6, 1  ;;  %v1291_v41 = vld [vmem:[%s1401_s6] ss:$0 sm:$0xff] (%p109_p4) }
  0xd7   :  { %v235_v9 = vsel (%p109_p4), %vm233_vm4, 1, %v983_v2  ;;  %v234_v10 = vsel (%p109_p4), %vm232_vm5, 1, %v983_v2  ;;  %v255_v11 = vsel (%p109_p4), %vm253_vm6, 1, %v983_v2  ;;  %v254_v12 = vsel (%p109_p4), %vm252_vm7, 1, %v983_v2  ;;  %v1296_v42 = vld [vmem:[%s1402_s7] ss:$0 sm:$0xff] (%p109_p4) }
  0xd8   :  { %vm273_vm8 = vcmp.eq.s32.totalorder (%p109_p4), %v1215_v5, 2  ;;  %vm272_vm9 = vcmp.eq.s32.totalorder (%p109_p4), %v1220_v6, 2  ;;  %vm293_vm10 = vcmp.eq.s32.totalorder (%p109_p4), %v1215_v5, 3  ;;  %vm292_vm11 = vcmp.eq.s32.totalorder (%p109_p4), %v1220_v6, 3  ;;  %v187_v47 = vld [vmem:[%s1397_s2] sm:$0x3] (%p109_p4) }
  0xd9   :  { %v275_v13 = vsel (%p109_p4), %vm273_vm8, 1, %v983_v2  ;;  %v274_v14 = vsel (%p109_p4), %vm272_vm9, 1, %v983_v2  ;;  %v295_v15 = vsel (%p109_p4), %vm293_vm10, 1, %v983_v2  ;;  %v294_v16 = vsel (%p109_p4), %vm292_vm11, 1, %v983_v2 }
  0xda   :  { %216 = vperm.xlu1 (%p109_p4), %726, %v211_v7   ;;  %196 = vperm.xlu0 (%p109_p4), %725, %v191_v8   ;;  %vm313_vm12 = vcmp.eq.s32.totalorder (%p109_p4), %v1215_v5, 4  ;;  %vm312_vm13 = vcmp.eq.s32.totalorder (%p109_p4), %v1220_v6, 4  ;;  %vm333_vm14 = vcmp.eq.s32.totalorder (%p109_p4), %v1215_v5, 5  ;;  %vm332_vm15 = vcmp.eq.s32.totalorder (%p109_p4), %v1220_v6, 5 }
  0xdb   :  { %v315_v17 = vsel %vm313_vm12, 1, %v983_v2  ;;  %v314_v18 = vsel %vm312_vm13, 1, %v983_v2  ;;  %v335_v19 = vsel %vm333_vm14, 1, %v983_v2  ;;  %v334_v20 = vsel %vm332_vm15, 1, %v983_v2 }
  0xdc   :  { %vm353_vm0 = vcmp.eq.s32.totalorder %v1215_v5, 6  ;;  %vm352_vm1 = vcmp.eq.s32.totalorder %v1220_v6, 6  ;;  %vm373_vm2 = vcmp.eq.s32.totalorder %v1215_v5, 7  ;;  %vm372_vm3 = vcmp.eq.s32.totalorder %v1220_v6, 7 }
  0xdd   :  { %v355_v21 = vsel %vm353_vm0, 1, %v983_v2  ;;  %v354_v22 = vsel %vm352_vm1, 1, %v983_v2  ;;  %v375_v23 = vsel %vm373_vm2, 1, %v983_v2  ;;  %v374_v24 = vsel %vm372_vm3, 1, %v983_v2 }
  0xde   :  { %240 = vperm.xlu1 %726, %v235_v9   ;;  %237 = vperm.xlu0 %725, %v234_v10   ;;  %vm393_vm4 = vcmp.eq.s32.totalorder %v1215_v5, 8  ;;  %vm392_vm5 = vcmp.eq.s32.totalorder %v1220_v6, 8  ;;  %vm413_vm6 = vcmp.eq.s32.totalorder %v1215_v5, 9  ;;  %vm412_vm7 = vcmp.eq.s32.totalorder %v1220_v6, 9 }
  0xdf   :  { %v395_v25 = vsel %vm393_vm4, 1, %v983_v2  ;;  %v394_v26 = vsel %vm392_vm5, 1, %v983_v2  ;;  %v415_v27 = vsel %vm413_vm6, 1, %v983_v2  ;;  %v414_v28 = vsel %vm412_vm7, 1, %v983_v2 }
  0xe0   :  { %vm433_vm8 = vcmp.eq.s32.totalorder %v1215_v5, 10  ;;  %vm432_vm9 = vcmp.eq.s32.totalorder %v1220_v6, 10  ;;  %vm453_vm10 = vcmp.eq.s32.totalorder %v1215_v5, 11  ;;  %vm452_vm11 = vcmp.eq.s32.totalorder %v1220_v6, 11 }
  0xe1   :  { %v435_v29 = vsel %vm433_vm8, 1, %v983_v2  ;;  %v434_v30 = vsel %vm432_vm9, 1, %v983_v2  ;;  %v455_v31 = vsel %vm453_vm10, 1, %v983_v2  ;;  %v454_v32 = vsel %vm452_vm11, 1, %v983_v2 }
  0xe2   :  { %260 = vperm.xlu1 %726, %v255_v11   ;;  %257 = vperm.xlu0 %725, %v254_v12   ;;  %vm473_vm12 = vcmp.eq.s32.totalorder %v1215_v5, 12  ;;  %vm472_vm13 = vcmp.eq.s32.totalorder %v1220_v6, 12  ;;  %vm493_vm14 = vcmp.eq.s32.totalorder %v1215_v5, 13  ;;  %vm492_vm15 = vcmp.eq.s32.totalorder %v1220_v6, 13  ;;  %v230_v11 = vld [vmem:[%s1398_s3] sm:$0xff] }
  0xe3   :  { %v475_v33 = vsel %vm473_vm12, 1, %v983_v2  ;;  %v474_v34 = vsel %vm472_vm13, 1, %v983_v2  ;;  %v495_v35 = vsel %vm493_vm14, 1, %v983_v2  ;;  %v494_v36 = vsel %vm492_vm15, 1, %v983_v2 }
  0xe4   :  { %vm513_vm0 = vcmp.eq.s32.totalorder %v1215_v5, 14  ;;  %vm512_vm1 = vcmp.eq.s32.totalorder %v1220_v6, 14  ;;  %vm533_vm2 = vcmp.eq.s32.totalorder %v1215_v5, 15  ;;  %vm532_vm3 = vcmp.eq.s32.totalorder %v1220_v6, 15 }
  0xe5   :  { %v515_v37 = vsel %vm513_vm0, 1, %v983_v2  ;;  %v514_v38 = vsel %vm512_vm1, 1, %v983_v2  ;;  %v535_v39 = vsel %vm533_vm2, 1, %v983_v2  ;;  %v534_v40 = vsel %vm532_vm3, 1, %v983_v2 }
  0xe6   :  { %280 = vperm.xlu1 %726, %v275_v13   ;;  %277 = vperm.xlu0 %725, %v274_v14   ;;  %v1298_v44 = vshrl.u32 %v200_v43, 7 }
  0xe8   :  { %v1301_v45 = vsub.s32 1, %v1298_v44  ;;  %v1304_v46 = vsub.s32 0, %v1298_v44  ;;  %v286_v10 = vsub.s32 2, %v1298_v44  ;;  %v306_v13 = vsub.s32 3, %v1298_v44 }
  0xea   :  { %300 = vperm.xlu1 %726, %v295_v15   ;;  %297 = vperm.xlu0 %725, %v294_v16   ;;  %v223_v48 = vrot.slane %v187_v47, %v1301_v45  ;;  %v203_v49 = vrot.slane %v187_v47, %v1304_v46  ;;  %v267_v12 = vrot.slane %v230_v11, %v1301_v45  ;;  %v326_v16 = vsub.s32 4, %v1298_v44 }
  0xee   :  { %320 = vperm.xlu1 %726, %v315_v17   ;;  %317 = vperm.xlu0 %725, %v314_v18   ;;  %v247_v17 = vrot.slane %v230_v11, %v1304_v46  ;;  %v287_v18 = vrot.slane %v230_v11, %v286_v10 }
  0xf2   :  { %340 = vperm.xlu1 %726, %v335_v19   ;;  %337 = vperm.xlu0 %725, %v334_v20  }
  0xf6   :  { %360 = vperm.xlu1 %726, %v355_v21   ;;  %357 = vperm.xlu0 %725, %v354_v22   ;;  %v307_v21 = vrot.slane %v230_v11, %v306_v13  ;;  %v346_v22 = vsub.s32 5, %v1298_v44 }
  0xfa   :  { %380 = vperm.xlu1 %726, %v375_v23   ;;  %377 = vperm.xlu0 %725, %v374_v24  }
  0xfe   :  { %400 = vperm.xlu1 %726, %v395_v25   ;;  %397 = vperm.xlu0 %725, %v394_v26   ;;  %v327_v25 = vrot.slane %v230_v11, %v326_v16  ;;  %v366_v26 = vsub.s32 6, %v1298_v44 }
 0x102   :  { %420 = vperm.xlu1 %726, %v415_v27   ;;  %417 = vperm.xlu0 %725, %v414_v28  }
 0x106   :  { %440 = vperm.xlu1 %726, %v435_v29   ;;  %437 = vperm.xlu0 %725, %v434_v30  }
 0x10a   :  { %460 = vperm.xlu1 %726, %v455_v31   ;;  %457 = vperm.xlu0 %725, %v454_v32  }
 0x10e   :  { %480 = vperm.xlu1 %726, %v475_v33   ;;  %477 = vperm.xlu0 %725, %v474_v34  }
 0x112   :  { %500 = vperm.xlu1 %726, %v495_v35   ;;  %497 = vperm.xlu0 %725, %v494_v36   ;;  %v347_v35 = vrot.slane %v230_v11, %v346_v22  ;;  %v386_v36 = vsub.s32 7, %v1298_v44 }
 0x116   :  { %520 = vperm.xlu1 %726, %v515_v37   ;;  %517 = vperm.xlu0 %725, %v514_v38  }
 0x11a   :  { %540 = vperm.xlu1 %726, %v535_v39   ;;  %537 = vperm.xlu0 %725, %v534_v40  }
 0x155   :  { %v214_v50 = vpop.permute.xlu1 %213  ;;  %v194_v51 = vpop.permute.xlu0 %193 }
 0x156   :  { %vm218_vm4 = vcmp.eq.s32.totalorder %v214_v50, 1  ;;  %vm198_vm5 = vcmp.eq.s32.totalorder %v194_v51, 1  ;;  %v1349_v51 = vld [vmem:[%s1398_s3 + $0x8] sm:$0xff] }
 0x157   :  { %v224_v52 = vsel %vm218_vm4, %v223_v48, 0.0  ;;  %v204_v53 = vsel %vm198_vm5, %v203_v49, 0.0 }
 0x158   :  { %v1311_v54 = vadd.f32 %v224_v52, %v204_v53 }
 0x159   :  { %v217_v55 = vpop.permute.xlu1 %216  ;;  %v197_v56 = vpop.permute.xlu0 %196 }
 0x15a   :  { %vm219_vm6 = vcmp.eq.s32.totalorder %v217_v55, 1  ;;  %vm199_vm7 = vcmp.eq.s32.totalorder %v197_v56, 1  ;;  %v387_v55 = vrot.slane %v230_v11, %v386_v36 }
 0x15b   :  { %v225_v57 = vsel %vm219_vm6, %v223_v48, 0.0  ;;  %v205_v58 = vsel %vm199_vm7, %v203_v49, 0.0  ;;  %v367_v48 = vrot.slane %v230_v11, %v366_v26 }
 0x15c   :  { %v1313_v59 = vadd.f32 %v225_v57, %v205_v58 }
 0x15d   :  { %v241_v60 = vpop.permute.xlu1 %240  ;;  %v238_v61 = vpop.permute.xlu0 %237 }
 0x15e   :  { %vm243_vm10 = vcmp.eq.s32.totalorder %v241_v60, 1  ;;  %vm242_vm11 = vcmp.eq.s32.totalorder %v238_v61, 1 }
 0x15f   :  { %v249_v27 = vsel %vm243_vm10, %v247_v17, 0.0  ;;  %v248_v28 = vsel %vm242_vm11, %v247_v17, 0.0 }
 0x161   :  { %v261_v62 = vpop.permute.xlu1 %260  ;;  %v258_v63 = vpop.permute.xlu0 %257 }
 0x162   :  { %vm263_vm8 = vcmp.eq.s32.totalorder %v261_v62, 1  ;;  %vm262_vm9 = vcmp.eq.s32.totalorder %v258_v63, 1  ;;  %v407_v63 = vrot.slane %v1349_v51, %v1304_v46  ;;  %v447_v46 = vrot.slane %v1349_v51, %v286_v10 }
 0x163   :  { %v269_v19 = vsel %vm263_vm8, %v267_v12, 0.0  ;;  %v268_v20 = vsel %vm262_vm9, %v267_v12, 0.0  ;;  %v487_v10 = vrot.slane %v1349_v51, %v326_v16  ;;  %v527_v16 = vrot.slane %v1349_v51, %v366_v26 }
 0x164   :  { %v271_v31 = vadd.f32 %v269_v19, %v249_v27  ;;  %v270_v32 = vadd.f32 %v268_v20, %v248_v28 }
 0x165   :  { %v281_v0 = vpop.permute.xlu1 %280  ;;  %v278_v1 = vpop.permute.xlu0 %277 }
 0x166   :  { %vm283_vm12 = vcmp.eq.s32.totalorder %v281_v0, 1  ;;  %vm282_vm13 = vcmp.eq.s32.totalorder %v278_v1, 1 }
 0x167   :  { %v289_v29 = vsel %vm283_vm12, %v287_v18, 0.0  ;;  %v288_v30 = vsel %vm282_vm13, %v287_v18, 0.0 }
 0x168   :  { %v291_v39 = vadd.f32 %v289_v29, %v271_v31  ;;  %v290_v40 = vadd.f32 %v288_v30, %v270_v32 }
 0x169   :  { %v301_v2 = vpop.permute.xlu1 %300  ;;  %v298_v3 = vpop.permute.xlu0 %297 }
 0x16a   :  { %vm303_vm14 = vcmp.eq.s32.totalorder %v301_v2, 1  ;;  %vm302_vm15 = vcmp.eq.s32.totalorder %v298_v3, 1 }
 0x16b   :  { %v309_v33 = vsel %vm303_vm14, %v307_v21, 0.0  ;;  %v308_v34 = vsel %vm302_vm15, %v307_v21, 0.0 }
 0x16c   :  { %v311_v49 = vadd.f32 %v309_v33, %v291_v39  ;;  %v310_v50 = vadd.f32 %v308_v34, %v290_v40 }
 0x16d   :  { %v321_v4 = vpop.permute.xlu1 %320  ;;  %v318_v5 = vpop.permute.xlu0 %317 }
 0x16e   :  { %vm323_vm0 = vcmp.eq.s32.totalorder %v321_v4, 1  ;;  %vm322_vm1 = vcmp.eq.s32.totalorder %v318_v5, 1  ;;  %v427_v4 = vrot.slane %v1349_v51, %v1301_v45  ;;  %v467_v45 = vrot.slane %v1349_v51, %v306_v13 }
 0x16f   :  { %v329_v43 = vsel %vm323_vm0, %v327_v25, 0.0  ;;  %v328_v47 = vsel %vm322_vm1, %v327_v25, 0.0  ;;  %v507_v13 = vrot.slane %v1349_v51, %v346_v22 }
 0x170   :  { %v331_v58 = vadd.f32 %v329_v43, %v311_v49  ;;  %v330_v60 = vadd.f32 %v328_v47, %v310_v50 }
 0x171   :  { %v341_v6 = vpop.permute.xlu1 %340  ;;  %v338_v7 = vpop.permute.xlu0 %337 }
 0x172   :  { %vm343_vm2 = vcmp.eq.s32.totalorder %v341_v6, 1  ;;  %vm342_vm3 = vcmp.eq.s32.totalorder %v338_v7, 1 }
 0x173   :  { %v349_v52 = vsel %vm343_vm2, %v347_v35, 0.0  ;;  %v348_v53 = vsel %vm342_vm3, %v347_v35, 0.0 }
 0x174   :  { %v351_v0 = vadd.f32 %v349_v52, %v331_v58  ;;  %v350_v1 = vadd.f32 %v348_v53, %v330_v60  ;;  %v547_v52 = vrot.slane %v1349_v51, %v386_v36 }
 0x175   :  { %v1315_v8 = vpop.permute.xlu1 %360  ;;  %v1317_v9 = vpop.permute.xlu0 %357 }
 0x176   :  { %vm363_vm4 = vcmp.eq.s32.totalorder %v1315_v8, 1  ;;  %vm362_vm5 = vcmp.eq.s32.totalorder %v1317_v9, 1 }
 0x177   :  { %v369_v61 = vsel %vm363_vm4, %v367_v48, 0.0  ;;  %v368_v62 = vsel %vm362_vm5, %v367_v48, 0.0 }
 0x178   :  { %v371_v7 = vadd.f32 %v369_v61, %v351_v0  ;;  %v370_v8 = vadd.f32 %v368_v62, %v350_v1 }
 0x179   :  { %v1325_v14 = vpop.permute.xlu1 %380  ;;  %v1327_v15 = vpop.permute.xlu0 %377 }
 0x17a   :  { %vm383_vm6 = vcmp.eq.s32.totalorder %v1325_v14, 1  ;;  %vm382_vm7 = vcmp.eq.s32.totalorder %v1327_v15, 1 }
 0x17b   :  { %v389_v2 = vsel %vm383_vm6, %v387_v55, 0.0  ;;  %v388_v3 = vsel %vm382_vm7, %v387_v55, 0.0 }
 0x17c   :  { %v391_v12 = vadd.f32 %v389_v2, %v371_v7  ;;  %v390_v14 = vadd.f32 %v388_v3, %v370_v8 }
 0x17d   :  { %v401_v23 = vpop.permute.xlu1 %400  ;;  %v398_v24 = vpop.permute.xlu0 %397 }
 0x17e   :  { %vm403_vm8 = vcmp.eq.s32.totalorder %v401_v23, 1  ;;  %vm402_vm9 = vcmp.eq.s32.totalorder %v398_v24, 1 }
 0x17f   :  { %v409_v9 = vsel %vm403_vm8, %v407_v63, 0.0  ;;  %v408_v11 = vsel %vm402_vm9, %v407_v63, 0.0 }
 0x180   :  { %v411_v20 = vadd.f32 %v409_v9, %v391_v12  ;;  %v410_v21 = vadd.f32 %v408_v11, %v390_v14 }
 0x181   :  { %v421_v37 = vpop.permute.xlu1 %420  ;;  %v418_v38 = vpop.permute.xlu0 %417 }
 0x182   :  { %vm423_vm10 = vcmp.eq.s32.totalorder %v421_v37, 1  ;;  %vm422_vm11 = vcmp.eq.s32.totalorder %v418_v38, 1 }
 0x183   :  { %v429_v15 = vsel %vm423_vm10, %v427_v4, 0.0  ;;  %v428_v17 = vsel %vm422_vm11, %v427_v4, 0.0 }
 0x184   :  { %v431_v25 = vadd.f32 %v429_v15, %v411_v20  ;;  %v430_v27 = vadd.f32 %v428_v17, %v410_v21 }
 0x185   :  { %v441_v56 = vpop.permute.xlu1 %440  ;;  %v438_v57 = vpop.permute.xlu0 %437 }
 0x186   :  { %vm443_vm12 = vcmp.eq.s32.totalorder %v441_v56, 1  ;;  %vm442_vm13 = vcmp.eq.s32.totalorder %v438_v57, 1 }
 0x187   :  { %v449_v23 = vsel %vm443_vm12, %v447_v46, 0.0  ;;  %v448_v24 = vsel %vm442_vm13, %v447_v46, 0.0 }
 0x188   :  { %v451_v32 = vadd.f32 %v449_v23, %v431_v25  ;;  %v450_v33 = vadd.f32 %v448_v24, %v430_v27 }
 0x189   :  { %v461_v5 = vpop.permute.xlu1 %460  ;;  %v458_v6 = vpop.permute.xlu0 %457 }
 0x18a   :  { %vm463_vm14 = vcmp.eq.s32.totalorder %v461_v5, 1  ;;  %vm462_vm15 = vcmp.eq.s32.totalorder %v458_v6, 1 }
 0x18b   :  { %v469_v28 = vsel %vm463_vm14, %v467_v45, 0.0  ;;  %v468_v29 = vsel %vm462_vm15, %v467_v45, 0.0 }
 0x18c   :  { %v471_v37 = vadd.f32 %v469_v28, %v451_v32  ;;  %v470_v38 = vadd.f32 %v468_v29, %v450_v33 }
 0x18d   :  { %v481_v18 = vpop.permute.xlu1 %480  ;;  %v478_v19 = vpop.permute.xlu0 %477 }
 0x18e   :  { %vm483_vm0 = vcmp.eq.s32.totalorder %v481_v18, 1  ;;  %vm482_vm1 = vcmp.eq.s32.totalorder %v478_v19, 1 }
 0x18f   :  { %v489_v34 = vsel %vm483_vm0, %v487_v10, 0.0  ;;  %v488_v35 = vsel %vm482_vm1, %v487_v10, 0.0 }
 0x190   :  { %v491_v48 = vadd.f32 %v489_v34, %v471_v37  ;;  %v490_v22 = vadd.f32 %v488_v35, %v470_v38 }
 0x191   :  { %v501_v30 = vpop.permute.xlu1 %500  ;;  %v498_v31 = vpop.permute.xlu0 %497 }
 0x192   :  { %vm503_vm2 = vcmp.eq.s32.totalorder %v501_v30, 1  ;;  %vm502_vm3 = vcmp.eq.s32.totalorder %v498_v31, 1 }
 0x193   :  { %v509_v39 = vsel %vm503_vm2, %v507_v13, 0.0  ;;  %v508_v40 = vsel %vm502_vm3, %v507_v13, 0.0 }
 0x194   :  { %v511_v53 = vadd.f32 %v509_v39, %v491_v48  ;;  %v510_v55 = vadd.f32 %v508_v40, %v490_v22 }
 0x195   :  { %v521_v43 = vpop.permute.xlu1 %520  ;;  %v518_v47 = vpop.permute.xlu0 %517 }
 0x196   :  { %vm523_vm4 = vcmp.eq.s32.totalorder %v521_v43, 1  ;;  %vm522_vm5 = vcmp.eq.s32.totalorder %v518_v47, 1 }
 0x197   :  { %v529_v49 = vsel %vm523_vm4, %v527_v16, 0.0  ;;  %v528_v50 = vsel %vm522_vm5, %v527_v16, 0.0 }
 0x198   :  { %v531_v57 = vadd.f32 %v529_v49, %v511_v53  ;;  %v530_v58 = vadd.f32 %v528_v50, %v510_v55 }
 0x199   :  { %v541_v56 = vpop.permute.xlu1 %540  ;;  %v538_v26 = vpop.permute.xlu0 %537 }
 0x19a   :  { %vm543_vm6 = vcmp.eq.s32.totalorder %v541_v56, 1  ;;  %vm542_vm7 = vcmp.eq.s32.totalorder %v538_v26, 1 }
 0x19b   :  { %v549_v60 = vsel %vm543_vm6, %v547_v52, 0.0  ;;  %v548_v61 = vsel %vm542_vm7, %v547_v52, 0.0 }
 0x19c   :  { %v551_v62 = vadd.f32 %v549_v60, %v531_v57  ;;  %v550_v63 = vadd.f32 %v548_v61, %v530_v58 }
 0x19e   :  { %v553_v0 = vadd.f32 %v551_v62, %v1313_v59  ;;  %v552_v1 = vadd.f32 %v550_v63, %v1311_v54 }
 0x19f   :  { %967 = dma.done.wait [#allocation3], 128 }
 0x1a0   :  { %968 = vsyncadd [#allocation3], 4294967168  ;;  %v557_v44 = vld [vmem:[#allocation2] sm:$0xff] }
 0x1a1   :  { %v558_v36 = vadd.f32 %v557_v44, %v552_v1 }
 0x1a3   :  { %559 = vadd.xlane.f32.xlu0 %v558_v36 }
 0x230   :  { %v560_v51 = vpop.xlane.xlu0 %559 }
 0x231   :  { %v562_v2 = vmul.f32 0.0078125, %v560_v51 }
 0x233   :  { %v563_v3 = vsub.f32 %v558_v36, %v562_v2 }
 0x235   :  { %v564_v4 = vmul.f32 %v563_v3, %v563_v3 }
 0x237   :  { %565 = vadd.xlane.f32.xlu0 %v564_v4 }
 0x2c4   :  { %v566_v5 = vpop.xlane.xlu0 %565 }
 0x2c5   :  { %v567_v6 = vmul.f32 0.0078125, %v566_v5 }
 0x2c7   :  { %v568_v7 = vadd.f32 1e-12, %v567_v6 }
 0x2c9   :  { %727 = vrsqrt.f32 %v568_v7 }
 0x2d3   :  { %v728_v8 = vpop.eup %727 }
 0x2d4   :  { %v570_v9 = vmul.f32 %v728_v8, %v563_v3 }
 0x2d6   :  { %v577_v59 = vmul.f32 %v1291_v41, %v570_v9 }
 0x2d8   :  { %v584_v54 = vadd.f32 %v1296_v42, %v577_v59 }
 0x2da   :  { %585 = vst [vmem:[#allocation6] sm:$0xff] %v584_v54 }
 0x2db   :  { %969 = dma.done.wait [#allocation3 + $0x1], 128 }
 0x2dc   :  { %970 = vsyncadd [#allocation3 + $0x1], 4294967168  ;;  %v589_v11 = vld [vmem:[#allocation2 + $0x8] sm:$0xff]  ;;  %s984_s3 = smov [#allocation6]  }
 0x2dd   :  { %v590_v46 = vadd.f32 %v589_v11, %v553_v0  ;;  %s610_s23 = sshll.u32 %s984_s3, 4  ;;  %s611_s23 = int_to_ptr.vmem [resolvable:$true] %s610_s23 }
 0x2de   :  { %s935_s18 = scalar_lea.vmem %s611_s23, 256  ;;  %p940_p6 = scmp.lt.s32.totalorder %s611_s23, %s611_s23 }
 0x2df   :  { %591 = vadd.xlane.f32.xlu0 %v590_v46  ;;  %p936_p5 = scmp.ne.s32.totalorder %s611_s23, %s935_s18  ;;  %p941_p7 = scmp.lt.s32.totalorder %s935_s18, %s935_s18 }
 0x2e1   :  { %p942_p8 = por %p941_p7, %p940_p6 }
 0x2e3   :  { %p943_p9 = pnand %p942_p8, %p936_p5 }
 0x36c   :  { %v592_v12 = vpop.xlane.xlu0 %591 }
 0x36d   :  { %v593_v14 = vmul.f32 0.0078125, %v592_v12 }
 0x36f   :  { %v594_v15 = vsub.f32 %v590_v46, %v593_v14 }
 0x371   :  { %v595_v17 = vmul.f32 %v594_v15, %v594_v15 }
 0x373   :  { %596 = vadd.xlane.f32.xlu0 %v595_v17 }
 0x400   :  { %v597_v45 = vpop.xlane.xlu0 %596 }
 0x401   :  { %v598_v18 = vmul.f32 0.0078125, %v597_v45 }
 0x403   :  { %v599_v19 = vadd.f32 1e-12, %v598_v18 }
 0x405   :  { %729 = vrsqrt.f32 %v599_v19 }
 0x40f   :  { %v730_v20 = vpop.eup %729 }
 0x410   :  { %v601_v21 = vmul.f32 %v730_v20, %v594_v15 }
 0x412   :  { %v602_v23 = vmul.f32 %v1291_v41, %v601_v21 }
 0x414   :  { %v603_v24 = vadd.f32 %v1296_v42, %v602_v23 }
 0x416   :  { %604 = vst [vmem:[#allocation6 + $0x8] sm:$0xff] %v603_v24 }
 0x417   :  { %946 = shalt.err (!%p943_p9)
}
 0x418   :  { %s947_s27 = scalar_lea.hbm %s1403_s8, 256 }
 0x419   :  { %p948_p10 = scmp.ne.s32.totalorder %s1403_s8, %s947_s27  ;;  %p951_p11 = scmp.lt.u32.totalorder %s947_s27, %s1403_s8 }
 0x41b   :  { %p953_p12 = pnand %p951_p11, %p948_p10 }
 0x41d   :  { %956 = shalt.err (!%p953_p12)
}
 0x41e   :  { %s985_s15 = smov 128   ;;  %s986_s25 = smov 8  }
 0x41f   :  { %616 = dma.vmem_to_hbm [thread:$0]  %s611_s23, 256, %s1403_s8, [#allocation7], %s985_s15, %s985_s15, %s986_s25  }
 0x420   :  { %971 = dma.done.wait [#allocation7], 256  }
 0x421   :  { %972 = vsyncadd [#allocation7], 4294967040 }
 0x422   :  { %620 = vsyncpa [#allocation7], 1 }
 0x423   :  { %621 = vsyncmov [#allocation3] }
 0x426   :  { %s622_s20 = vpop.sfrf %621 }
 0x427   :  { %p702_p13 = scmp.ne.s32.totalorder %s622_s20, 0 }
 0x429   :  { %626 = shalt.err (%p702_p13)  }
 0x42a   :  { %628 = vsyncmov [#allocation3 + $0x1] }
 0x42d   :  { %s629_s24 = vpop.sfrf %628 }
 0x42e   :  { %p703_p0 = scmp.ne.s32.totalorder %s629_s24, 0 }
 0x430   :  { %633 = shalt.err (%p703_p0)  }

</bundles_post_ra>
